<compile_context>
chip_gen: v7x
topology: tpu7x:2x2x1
jax: 0.10.0
libtpu: 0.0.40
codegen_flags: <defaults>
</compile_context>

<pallas_src>
import functools

import jax
import jax.numpy as jnp
from jax.experimental import pallas as pl
from jax.experimental.pallas import tpu as pltpu


_UNROLL = 4      # manual unroll factor of the GRU time loop
_SUBLANE = 8


def _round_up(x, m):
    return (x + m - 1) // m * m


# ----------------------------------------------------------------------------
# Pallas kernels
# ----------------------------------------------------------------------------
def _gru_scan_kernel(gi_ref, whh_ref, bhn_ref, out_ref, h_ref):
    """GRU recurrence over one time chunk (input projection pre-computed).

    Grid: (num_directions, num_time_chunks).  Direction 0 scans forward,
    direction 1 scans backward: its time blocks AND in-block steps are visited
    in reverse, so outputs land in natural time order without any flips.

    gi_ref : (CT, Bp, 3H) f32  -- x @ W_ih + b_ih (+ b_hh[r,z] folded in)
    whh_ref: (H, 3H)      bf16 -- recurrent weights (resident across chunks)
    bhn_ref: (1, H)       f32  -- b_hh of the n gate (stays inside r * (...))
    out_ref: (CT, Bp, H)  f32
    h_ref  : (Bp, H)      f32 VMEM scratch, persistent across the time axis
    """
    d = pl.program_id(0)

    @pl.when(pl.program_id(1) == 0)
    def _():
        h_ref[...] = jnp.zeros_like(h_ref)

    CT = gi_ref.shape[0]
    H = whh_ref.shape[0]

    def body(sb, carry):
        for u in range(_UNROLL):                       # manual unroll
            s = sb * _UNROLL + u
            # forward: idx = s ; backward: idx = CT - 1 - s
            idx = s + d * (CT - 1 - 2 * s)
            gi = gi_ref[idx]                           # (Bp, 3H) f32
            h = h_ref[...]                             # (Bp, H)  f32
            gh = jnp.dot(h.astype(whh_ref.dtype), whh_ref[...],
                         preferred_element_type=jnp.float32)
            r = jax.nn.sigmoid(gi[:, 0:H] + gh[:, 0:H])
            z = jax.nn.sigmoid(gi[:, H:2 * H] + gh[:, H:2 * H])
            n = jnp.tanh(gi[:, 2 * H:] + r * (gh[:, 2 * H:] + bhn_ref[...]))
            h_new = (1.0 - z) * n + z * h
            h_ref[...] = h_new
            out_ref[idx] = h_new
        return carry

    jax.lax.fori_loop(0, CT // _UNROLL, body, 0)


def _mlp_kernel(x_ref, w1_ref, b1_ref, w2_ref, b2_ref, o_ref):
    """relu(x @ W1 + b1) @ W2 + b2 over one row tile (bf16 MXU, f32 accum)."""
    h = jnp.dot(x_ref[...], w1_ref[...],
                preferred_element_type=jnp.float32) + b1_ref[...]
    h = jnp.maximum(h, 0.0)
    o_ref[...] = jnp.dot(h.astype(w2_ref.dtype), w2_ref[...],
                         preferred_element_type=jnp.float32) + b2_ref[...]


# ----------------------------------------------------------------------------
# Kernel wrappers
# ----------------------------------------------------------------------------
def gru_scan(gi, whh, bhn, *, chunk_target=256, vmem_block_budget=4 << 20):
    """Run D independent GRU scans (D=1 uni, D=2 fwd+bwd) over pre-projected gates.

    gi : (D, T, Bp, 3H) f32   whh: (D, H, 3H) bf16   bhn: (D, 1, H) f32
    returns (D, T, Bp, H) f32.  Direction 1 (if present) is scanned backward.
    """
    D, T, Bp, G3 = gi.shape
    H = whh.shape[1]

    # Size the time chunk so streamed blocks (gi in + out, double-buffered)
    # stay within a modest VMEM budget on every TPU generation.
    step_bytes = Bp * (G3 + H) * 4 * 2
    chunk = min(chunk_target, T, max(_UNROLL, vmem_block_budget // step_bytes))
    chunk = _round_up(max(chunk, _UNROLL), _UNROLL)
    nT = -(-T // chunk)
    Tp = nT * chunk

    if Tp != T:
        # Identity padding: a huge positive z-gate pre-activation makes
        # sigmoid(z) == 1.0, so padded steps leave the hidden state untouched
        # (forward: pads run last; backward: pads run first on h == 0).
        pad = jnp.zeros((D, Tp - T, Bp, G3), gi.dtype)
        pad = pad.at[..., H:2 * H].set(1e4)
        gi = jnp.concatenate([gi, pad], axis=1)

    # direction 0 walks time blocks forward, direction 1 walks them backward
    rev = lambda d, t: (d, t + d * (nT - 1 - 2 * t), 0, 0)

    out = pl.pallas_call(
        _gru_scan_kernel,
        out_shape=jax.ShapeDtypeStruct((D, Tp, Bp, H), jnp.float32),
        grid_spec=pltpu.PrefetchScalarGridSpec(
            num_scalar_prefetch=0,
            grid=(D, nT),
            in_specs=[
                pl.BlockSpec((None, chunk, Bp, G3), rev),
                pl.BlockSpec((None, H, G3), lambda d, t: (d, 0, 0)),
                pl.BlockSpec((None, 1, H), lambda d, t: (d, 0, 0)),
            ],
            out_specs=pl.BlockSpec((None, chunk, Bp, H), rev),
            scratch_shapes=[pltpu.VMEM((Bp, H), jnp.float32)],
        ),
        compiler_params=pltpu.CompilerParams(
            dimension_semantics=("parallel", "arbitrary")),
    )(gi, whh, bhn)
    return out[:, :T]


def _fold_biases(b_ih, b_hh, H):
    """b_ih + b_hh[r,z] fold into the hoisted projection; b_hh[n] stays in-loop."""
    gate_bias = b_ih + jnp.concatenate(
        [b_hh[:, :2 * H], jnp.zeros((1, H), b_hh.dtype)], axis=1)
    return gate_bias, b_hh[:, 2 * H:]


def _input_proj(x_tbd, w_ih, gate_bias):
    """Hoisted full-sequence input projection (bf16 MXU, f32 accumulate)."""
    T, Bp, Din = x_tbd.shape
    gi = jnp.dot(x_tbd.reshape(T * Bp, Din).astype(jnp.bfloat16),
                 w_ih.astype(jnp.bfloat16),
                 preferred_element_type=jnp.float32)
    return gi.reshape(T, Bp, -1) + gate_bias


def bigru_layer(x_tbd, fwd_params, bwd_params):
    """Bidirectional GRU layer; both directions share one pallas_call with a
    leading 'parallel' grid axis (each v7x TensorCore takes one direction)."""
    gis, whhs, bhns = [], [], []
    for w_ih, w_hh, b_ih, b_hh in (fwd_params, bwd_params):
        H = w_hh.shape[0]
        gate_bias, b_hn = _fold_biases(b_ih, b_hh, H)
        gis.append(_input_proj(x_tbd, w_ih, gate_bias))
        whhs.append(w_hh.astype(jnp.bfloat16))
        bhns.append(b_hn)
    out = gru_scan(jnp.stack(gis), jnp.stack(whhs), jnp.stack(bhns))
    return jnp.concatenate([out[0], out[1]], axis=-1)        # (T, Bp, 2H)


def mlp_head(x, w1, b1, w2, b2, *, tile_n=512):
    """Row-tiled fc1 -> relu -> fc2 head."""
    N, R = x.shape
    Fc = w1.shape[1]
    Q = w2.shape[1]
    tn = min(tile_n, _round_up(N, _SUBLANE))
    Np = _round_up(N, tn)
    if Np != N:
        x = jnp.concatenate([x, jnp.zeros((Np - N, R), x.dtype)], axis=0)
    out = pl.pallas_call(
        _mlp_kernel,
        out_shape=jax.ShapeDtypeStruct((Np, Q), jnp.float32),
        grid_spec=pltpu.PrefetchScalarGridSpec(
            num_scalar_prefetch=0,
            grid=(Np // tn,),
            in_specs=[
                pl.BlockSpec((tn, R), lambda i: (i, 0)),
                pl.BlockSpec((R, Fc), lambda i: (0, 0)),
                pl.BlockSpec((1, Fc), lambda i: (0, 0)),
                pl.BlockSpec((Fc, Q), lambda i: (0, 0)),
                pl.BlockSpec((1, Q), lambda i: (0, 0)),
            ],
            out_specs=pl.BlockSpec((tn, Q), lambda i: (i, 0)),
        ),
        compiler_params=pltpu.CompilerParams(
            dimension_semantics=("parallel",)),
    )(x.astype(jnp.bfloat16), w1.astype(jnp.bfloat16), b1,
      w2.astype(jnp.bfloat16), b2)
    return out[:N]


# ----------------------------------------------------------------------------
# Vocoder forward (teacher forcing), matching the PyTorch module semantics
# ----------------------------------------------------------------------------
def vocoder_forward(params, wavs, mels, *, pad, frames_per_slice, hop_length):
    B, T_mel, M = mels.shape
    T_wav = wavs.shape[1]

    # Pad the batch to full sublanes (8); padded rows are sliced off at the end.
    Bp = _round_up(B, _SUBLANE)
    if Bp != B:
        mels = jnp.concatenate(
            [mels, jnp.zeros((Bp - B, T_mel, M), mels.dtype)], axis=0)
        wavs = jnp.concatenate(
            [wavs, jnp.zeros((Bp - B, T_wav), wavs.dtype)], axis=0)

    # ---- rnn1: 2-layer bidirectional GRU over mels (time-major) ----
    x = jnp.transpose(mels, (1, 0, 2)).astype(jnp.float32)     # (T_mel, Bp, M)
    h = bigru_layer(x, params["rnn1_l0_f"], params["rnn1_l0_b"])
    h = bigru_layer(h, params["rnn1_l1_f"], params["rnn1_l1_b"])  # (T_mel, Bp, 2C)

    # ---- rnn2 input projection (hoisted, repeat/concat-free) ----
    w_ih2, w_hh2, b_ih2, b_hh2 = params["rnn2"]
    R = w_hh2.shape[0]
    E = params["embedding"].shape[1]
    gate_bias2, b_hn2 = _fold_biases(b_ih2, b_hh2, R)

    # Conditioning rows of W_ih2: project once per mel frame, then nearest-
    # neighbour upsample (== F.interpolate(nearest, hop)) by repeating rows.
    sl = h[pad:pad + frames_per_slice]                         # (fps, Bp, 2C)
    cond_gi = jnp.dot(sl.reshape(-1, sl.shape[-1]).astype(jnp.bfloat16),
                      w_ih2[E:].astype(jnp.bfloat16),
                      preferred_element_type=jnp.float32)
    cond_gi = cond_gi.reshape(frames_per_slice, Bp, 3 * R)
    cond_gi = jnp.repeat(cond_gi, hop_length, axis=0)          # (T_wav, Bp, 3R)

    # Wav-embedding rows of W_ih2 folded into the embedding table (exact).
    emb_proj = jnp.dot(params["embedding"], w_ih2[:E],
                       preferred_element_type=jnp.float32)     # (Q, 3R)
    wav_gi = jnp.take(emb_proj, wavs.T, axis=0)                # (T_wav, Bp, 3R)

    gi2 = wav_gi + cond_gi + gate_bias2                        # (T_wav, Bp, 3R)

    # ---- rnn2: unidirectional GRU recurrence ----
    wav_outs = gru_scan(gi2[None], w_hh2.astype(jnp.bfloat16)[None],
                        b_hn2[None])[0]                        # (T_wav, Bp, R)

    # ---- fc1 -> relu -> fc2 head ----
    flat = wav_outs.reshape(T_wav * Bp, R)
    out = mlp_head(flat, params["fc1_w"], params["fc1_b"],
                   params["fc2_w"], params["fc2_b"])
    out = jnp.transpose(out.reshape(T_wav, Bp, -1), (1, 0, 2))[:B]
    return out

# TODO(synk): autoregressive `generate()` (multinomial sampling loop with
# packed variable-length sequences) is not implemented; only the teacher-forced
# forward() is reproduced.


# ----------------------------------------------------------------------------
# Deterministic parameter init + smoke test
# ----------------------------------------------------------------------------
if __name__ == "__main__":
    # Module hyper-parameters (small, consistent with the PyTorch __init__)
    sample_rate = 16000          # unused in forward()
    frames_per_sample = 12
    frames_per_slice = 8
    mel_channels = 16
    conditioning_channels = 16
    embedding_dim = 32
    rnn_channels = 32
    fc_channels = 32
    bits = 4
    hop_length = 4

    quant = 2 ** bits
    pad = (frames_per_sample - frames_per_slice) // 2

    key = jax.random.PRNGKey(0)
    keys = jax.random.split(key, 16)

    def u(k, shape, scale=0.1):
        return ((jax.random.uniform(k, shape, jnp.float32) * 2.0 - 1.0) * scale)

    def gru_params(k, din, h):
        ks = jax.random.split(k, 4)
        # stored as (Din, 3H) / (H, 3H) == PyTorch weight_ih.T / weight_hh.T
        return (u(ks[0], (din, 3 * h)), u(ks[1], (h, 3 * h)),
                u(ks[2], (1, 3 * h)), u(ks[3], (1, 3 * h)))

    params = {
        "rnn1_l0_f": gru_params(keys[0], mel_channels, conditioning_channels),
        "rnn1_l0_b": gru_params(keys[1], mel_channels, conditioning_channels),
        "rnn1_l1_f": gru_params(keys[2], 2 * conditioning_channels, conditioning_channels),
        "rnn1_l1_b": gru_params(keys[3], 2 * conditioning_channels, conditioning_channels),
        "embedding": u(keys[4], (quant, embedding_dim), 1.0),
        "rnn2": gru_params(keys[5], embedding_dim + 2 * conditioning_channels, rnn_channels),
        "fc1_w": u(keys[6], (rnn_channels, fc_channels)),
        "fc1_b": u(keys[7], (1, fc_channels)),
        "fc2_w": u(keys[8], (fc_channels, quant)),
        "fc2_b": u(keys[9], (1, quant)),
    }

    B = 2
    T_wav = frames_per_slice * hop_length                      # 32
    mels = jax.random.normal(keys[10], (B, frames_per_sample, mel_channels),
                             jnp.float32)
    wavs = jax.random.randint(keys[11], (B, T_wav), 0, quant, dtype=jnp.int32)

    fwd = jax.jit(functools.partial(vocoder_forward, pad=pad,
                                    frames_per_slice=frames_per_slice,
                                    hop_length=hop_length))
    out = fwd(params, wavs, mels)
    jax.block_until_ready(out)

    assert out.shape == (B, T_wav, quant), out.shape
    assert out.dtype == jnp.float32
    assert bool(jnp.all(jnp.isfinite(out)))
    print("KERNEL_OK")
</pallas_src>

<mosaic_0001>
module attributes {stable_mosaic.version = 11 : i64} {
  func.func @_gru_scan_kernel(%arg0: i32, %arg1: i32, %arg2: memref<1x12x8x48xf32, #tpu.memory_space<vmem>>, %arg3: memref<1x16x48xbf16, #tpu.memory_space<vmem>>, %arg4: memref<1x1x16xf32, #tpu.memory_space<vmem>>, %arg5: memref<1x12x8x16xf32, #tpu.memory_space<vmem>>, %arg6: memref<8x16xf32, #tpu.memory_space<vmem>>) attributes {dimension_semantics = [#tpu.dimension_semantics<parallel>, #tpu.dimension_semantics<arbitrary>], iteration_bounds = array<i64: 2, 1>, scalar_prefetch = 0 : i64, scratch_operands = 1 : i64, tpu.core_type = #tpu.core_type<tc>, window_params = [{transform_indices = @transform_0, window_bounds = array<i64: 1, 12, 8, 48>}, {transform_indices = @transform_1, window_bounds = array<i64: 1, 16, 48>}, {transform_indices = @transform_2, window_bounds = array<i64: 1, 1, 16>}, {transform_indices = @transform_3, window_bounds = array<i64: 1, 12, 8, 16>}]} {
    %c0_i32 = arith.constant 0 : i32
    %0 = arith.cmpi eq, %arg1, %c0_i32 : i32
    %1 = arith.extui %0 : i1 to i32
    %c0_i32_0 = arith.constant 0 : i32
    %2 = arith.cmpi ne, %1, %c0_i32_0 : i32
    scf.if %2 {
      %cst = arith.constant 0.000000e+00 : f32
      %4 = vector.broadcast %cst : f32 to vector<8x16xf32>
      %c0 = arith.constant 0 : index
      %c0_3 = arith.constant 0 : index
      %5 = vector.load %arg6[%c0, %c0_3] : memref<8x16xf32, #tpu.memory_space<vmem>>, vector<8x16xf32>
      tpu.vector_store %arg6[%c0, %c0_3], %4 {strides = array<i32>} : memref<8x16xf32, #tpu.memory_space<vmem>>, vector<8x16xf32>,
    } else {
    }
    %c0_i32_1 = arith.constant 0 : i32
    %c3_i32 = arith.constant 3 : i32
    %3 = arith.addi %c0_i32_1, %c3_i32 : i32
    %c1_i32 = arith.constant 1 : i32
    scf.for %arg7 = %c0_i32_1 to %3 step %c1_i32  : i32 {
      %c4_i32 = arith.constant 4 : i32
      %4 = arith.muli %arg7, %c4_i32 : i32
      %c0_i32_3 = arith.constant 0 : i32
      %5 = arith.addi %4, %c0_i32_3 : i32
      %c2_i32 = arith.constant 2 : i32
      %6 = arith.muli %c2_i32, %5 : i32
      %c11_i32 = arith.constant 11 : i32
      %7 = arith.subi %c11_i32, %6 : i32
      %8 = arith.muli %arg0, %7 : i32
      %9 = arith.addi %5, %8 : i32
      %c0 = arith.constant 0 : index
      %10 = arith.index_cast %9 : i32 to index
      %c0_4 = arith.constant 0 : index
      %c0_5 = arith.constant 0 : index
      %11 = vector.load %arg2[%c0, %10, %c0_4, %c0_5] : memref<1x12x8x48xf32, #tpu.memory_space<vmem>>, vector<1x1x8x48xf32>
      %12 = vector.shape_cast %11 : vector<1x1x8x48xf32> to vector<8x48xf32>
      %c0_6 = arith.constant 0 : index
      %c0_7 = arith.constant 0 : index
      %13 = vector.load %arg6[%c0_6, %c0_7] : memref<8x16xf32, #tpu.memory_space<vmem>>, vector<8x16xf32>
      %14 = arith.truncf %13 : vector<8x16xf32> to vector<8x16xbf16>
      %c0_8 = arith.constant 0 : index
      %c0_9 = arith.constant 0 : index
      %c0_10 = arith.constant 0 : index
      %15 = vector.load %arg3[%c0_8, %c0_9, %c0_10] : memref<1x16x48xbf16, #tpu.memory_space<vmem>>, vector<1x16x48xbf16>
      %16 = vector.shape_cast %15 : vector<1x16x48xbf16> to vector<16x48xbf16>
      %cst = arith.constant dense<0.000000e+00> : vector<8x48xf32>
      %17 = tpu.matmul %14, %16, %cst {dimension_numbers = #tpu.dot_dimension_numbers<[1], [0], [0], [1], [0, 0, 1, 1], [], []>} : vector<8x16xbf16>, vector<16x48xbf16>, vector<8x48xf32> -> vector<8x48xf32>
      %18 = vector.extract_strided_slice %12 {offsets = [0, 0], sizes = [8, 16], strides = [1, 1]} : vector<8x48xf32> to vector<8x16xf32>
      %19 = vector.extract_strided_slice %17 {offsets = [0, 0], sizes = [8, 16], strides = [1, 1]} : vector<8x48xf32> to vector<8x16xf32>
      %20 = arith.addf %18, %19 : vector<8x16xf32>
      %21 = arith.negf %20 : vector<8x16xf32>
      %22 = math.exp %21 : vector<8x16xf32>
      %cst_11 = arith.constant 1.000000e+00 : f32
      %23 = vector.broadcast %cst_11 : f32 to vector<8x16xf32>
      %24 = arith.addf %23, %22 : vector<8x16xf32>
      %25 = arith.divf %23, %24 : vector<8x16xf32>
      %26 = vector.extract_strided_slice %12 {offsets = [0, 16], sizes = [8, 16], strides = [1, 1]} : vector<8x48xf32> to vector<8x16xf32>
      %27 = vector.extract_strided_slice %17 {offsets = [0, 16], sizes = [8, 16], strides = [1, 1]} : vector<8x48xf32> to vector<8x16xf32>
      %28 = arith.addf %26, %27 : vector<8x16xf32>
      %29 = arith.negf %28 : vector<8x16xf32>
      %30 = math.exp %29 : vector<8x16xf32>
      %cst_12 = arith.constant 1.000000e+00 : f32
      %31 = vector.broadcast %cst_12 : f32 to vector<8x16xf32>
      %32 = arith.addf %31, %30 : vector<8x16xf32>
      %33 = arith.divf %31, %32 : vector<8x16xf32>
      %34 = vector.extract_strided_slice %12 {offsets = [0, 32], sizes = [8, 16], strides = [1, 1]} : vector<8x48xf32> to vector<8x16xf32>
      %35 = vector.extract_strided_slice %17 {offsets = [0, 32], sizes = [8, 16], strides = [1, 1]} : vector<8x48xf32> to vector<8x16xf32>
      %c0_13 = arith.constant 0 : index
      %c0_14 = arith.constant 0 : index
      %c0_15 = arith.constant 0 : index
      %36 = vector.load %arg4[%c0_13, %c0_14, %c0_15] : memref<1x1x16xf32, #tpu.memory_space<vmem>>, vector<1x1x16xf32>
      %37 = vector.shape_cast %36 : vector<1x1x16xf32> to vector<1x16xf32>
      %38 = vector.broadcast %37 : vector<1x16xf32> to vector<8x16xf32>
      %39 = arith.addf %35, %38 : vector<8x16xf32>
      %40 = arith.mulf %25, %39 : vector<8x16xf32>
      %41 = arith.addf %34, %40 : vector<8x16xf32>
      %42 = math.tanh %41 : vector<8x16xf32>
      %cst_16 = arith.constant 1.000000e+00 : f32
      %43 = vector.broadcast %cst_16 : f32 to vector<8x16xf32>
      %44 = arith.subf %43, %33 : vector<8x16xf32>
      %45 = arith.mulf %44, %42 : vector<8x16xf32>
      %46 = arith.mulf %33, %13 : vector<8x16xf32>
      %47 = arith.addf %45, %46 : vector<8x16xf32>
      %c0_17 = arith.constant 0 : index
      %c0_18 = arith.constant 0 : index
      %48 = vector.load %arg6[%c0_17, %c0_18] : memref<8x16xf32, #tpu.memory_space<vmem>>, vector<8x16xf32>
      tpu.vector_store %arg6[%c0_17, %c0_18], %47 {strides = array<i32>} : memref<8x16xf32, #tpu.memory_space<vmem>>, vector<8x16xf32>,
      %c0_19 = arith.constant 0 : index
      %49 = arith.index_cast %9 : i32 to index
      %c0_20 = arith.constant 0 : index
      %c0_21 = arith.constant 0 : index
      %50 = vector.load %arg5[%c0_19, %49, %c0_20, %c0_21] : memref<1x12x8x16xf32, #tpu.memory_space<vmem>>, vector<1x1x8x16xf32>
      %51 = vector.shape_cast %50 : vector<1x1x8x16xf32> to vector<8x16xf32>
      %52 = vector.shape_cast %47 : vector<8x16xf32> to vector<1x1x8x16xf32>
      tpu.vector_store %arg5[%c0_19, %49, %c0_20, %c0_21], %52 {strides = array<i32>} : memref<1x12x8x16xf32, #tpu.memory_space<vmem>>, vector<1x1x8x16xf32>,
      %c4_i32_22 = arith.constant 4 : i32
      %53 = arith.muli %arg7, %c4_i32_22 : i32
      %c1_i32_23 = arith.constant 1 : i32
      %54 = arith.addi %53, %c1_i32_23 : i32
      %c2_i32_24 = arith.constant 2 : i32
      %55 = arith.muli %c2_i32_24, %54 : i32
      %c11_i32_25 = arith.constant 11 : i32
      %56 = arith.subi %c11_i32_25, %55 : i32
      %57 = arith.muli %arg0, %56 : i32
      %58 = arith.addi %54, %57 : i32
      %c0_26 = arith.constant 0 : index
      %59 = arith.index_cast %58 : i32 to index
      %c0_27 = arith.constant 0 : index
      %c0_28 = arith.constant 0 : index
      %60 = vector.load %arg2[%c0_26, %59, %c0_27, %c0_28] : memref<1x12x8x48xf32, #tpu.memory_space<vmem>>, vector<1x1x8x48xf32>
      %61 = vector.shape_cast %60 : vector<1x1x8x48xf32> to vector<8x48xf32>
      %c0_29 = arith.constant 0 : index
      %c0_30 = arith.constant 0 : index
      %62 = vector.load %arg6[%c0_29, %c0_30] : memref<8x16xf32, #tpu.memory_space<vmem>>, vector<8x16xf32>
      %63 = arith.truncf %62 : vector<8x16xf32> to vector<8x16xbf16>
      %c0_31 = arith.constant 0 : index
      %c0_32 = arith.constant 0 : index
      %c0_33 = arith.constant 0 : index
      %64 = vector.load %arg3[%c0_31, %c0_32, %c0_33] : memref<1x16x48xbf16, #tpu.memory_space<vmem>>, vector<1x16x48xbf16>
      %65 = vector.shape_cast %64 : vector<1x16x48xbf16> to vector<16x48xbf16>
      %cst_34 = arith.constant dense<0.000000e+00> : vector<8x48xf32>
      %66 = tpu.matmul %63, %65, %cst_34 {dimension_numbers = #tpu.dot_dimension_numbers<[1], [0], [0], [1], [0, 0, 1, 1], [], []>} : vector<8x16xbf16>, vector<16x48xbf16>, vector<8x48xf32> -> vector<8x48xf32>
      %67 = vector.extract_strided_slice %61 {offsets = [0, 0], sizes = [8, 16], strides = [1, 1]} : vector<8x48xf32> to vector<8x16xf32>
      %68 = vector.extract_strided_slice %66 {offsets = [0, 0], sizes = [8, 16], strides = [1, 1]} : vector<8x48xf32> to vector<8x16xf32>
      %69 = arith.addf %67, %68 : vector<8x16xf32>
      %70 = arith.negf %69 : vector<8x16xf32>
      %71 = math.exp %70 : vector<8x16xf32>
      %cst_35 = arith.constant 1.000000e+00 : f32
      %72 = vector.broadcast %cst_35 : f32 to vector<8x16xf32>
      %73 = arith.addf %72, %71 : vector<8x16xf32>
      %74 = arith.divf %72, %73 : vector<8x16xf32>
      %75 = vector.extract_strided_slice %61 {offsets = [0, 16], sizes = [8, 16], strides = [1, 1]} : vector<8x48xf32> to vector<8x16xf32>
      %76 = vector.extract_strided_slice %66 {offsets = [0, 16], sizes = [8, 16], strides = [1, 1]} : vector<8x48xf32> to vector<8x16xf32>
      %77 = arith.addf %75, %76 : vector<8x16xf32>
      %78 = arith.negf %77 : vector<8x16xf32>
      %79 = math.exp %78 : vector<8x16xf32>
      %cst_36 = arith.constant 1.000000e+00 : f32
      %80 = vector.broadcast %cst_36 : f32 to vector<8x16xf32>
      %81 = arith.addf %80, %79 : vector<8x16xf32>
      %82 = arith.divf %80, %81 : vector<8x16xf32>
      %83 = vector.extract_strided_slice %61 {offsets = [0, 32], sizes = [8, 16], strides = [1, 1]} : vector<8x48xf32> to vector<8x16xf32>
      %84 = vector.extract_strided_slice %66 {offsets = [0, 32], sizes = [8, 16], strides = [1, 1]} : vector<8x48xf32> to vector<8x16xf32>
      %c0_37 = arith.constant 0 : index
      %c0_38 = arith.constant 0 : index
      %c0_39 = arith.constant 0 : index
      %85 = vector.load %arg4[%c0_37, %c0_38, %c0_39] : memref<1x1x16xf32, #tpu.memory_space<vmem>>, vector<1x1x16xf32>
      %86 = vector.shape_cast %85 : vector<1x1x16xf32> to vector<1x16xf32>
      %87 = vector.broadcast %86 : vector<1x16xf32> to vector<8x16xf32>
      %88 = arith.addf %84, %87 : vector<8x16xf32>
      %89 = arith.mulf %74, %88 : vector<8x16xf32>
      %90 = arith.addf %83, %89 : vector<8x16xf32>
      %91 = math.tanh %90 : vector<8x16xf32>
      %cst_40 = arith.constant 1.000000e+00 : f32
      %92 = vector.broadcast %cst_40 : f32 to vector<8x16xf32>
      %93 = arith.subf %92, %82 : vector<8x16xf32>
      %94 = arith.mulf %93, %91 : vector<8x16xf32>
      %95 = arith.mulf %82, %62 : vector<8x16xf32>
      %96 = arith.addf %94, %95 : vector<8x16xf32>
      %c0_41 = arith.constant 0 : index
      %c0_42 = arith.constant 0 : index
      %97 = vector.load %arg6[%c0_41, %c0_42] : memref<8x16xf32, #tpu.memory_space<vmem>>, vector<8x16xf32>
      tpu.vector_store %arg6[%c0_41, %c0_42], %96 {strides = array<i32>} : memref<8x16xf32, #tpu.memory_space<vmem>>, vector<8x16xf32>,
      %c0_43 = arith.constant 0 : index
      %98 = arith.index_cast %58 : i32 to index
      %c0_44 = arith.constant 0 : index
      %c0_45 = arith.constant 0 : index
      %99 = vector.load %arg5[%c0_43, %98, %c0_44, %c0_45] : memref<1x12x8x16xf32, #tpu.memory_space<vmem>>, vector<1x1x8x16xf32>
      %100 = vector.shape_cast %99 : vector<1x1x8x16xf32> to vector<8x16xf32>
      %101 = vector.shape_cast %96 : vector<8x16xf32> to vector<1x1x8x16xf32>
      tpu.vector_store %arg5[%c0_43, %98, %c0_44, %c0_45], %101 {strides = array<i32>} : memref<1x12x8x16xf32, #tpu.memory_space<vmem>>, vector<1x1x8x16xf32>,
      %c4_i32_46 = arith.constant 4 : i32
      %102 = arith.muli %arg7, %c4_i32_46 : i32
      %c2_i32_47 = arith.constant 2 : i32
      %103 = arith.addi %102, %c2_i32_47 : i32
      %c2_i32_48 = arith.constant 2 : i32
      %104 = arith.muli %c2_i32_48, %103 : i32
      %c11_i32_49 = arith.constant 11 : i32
      %105 = arith.subi %c11_i32_49, %104 : i32
      %106 = arith.muli %arg0, %105 : i32
      %107 = arith.addi %103, %106 : i32
      %c0_50 = arith.constant 0 : index
      %108 = arith.index_cast %107 : i32 to index
      %c0_51 = arith.constant 0 : index
      %c0_52 = arith.constant 0 : index
      %109 = vector.load %arg2[%c0_50, %108, %c0_51, %c0_52] : memref<1x12x8x48xf32, #tpu.memory_space<vmem>>, vector<1x1x8x48xf32>
      %110 = vector.shape_cast %109 : vector<1x1x8x48xf32> to vector<8x48xf32>
      %c0_53 = arith.constant 0 : index
      %c0_54 = arith.constant 0 : index
      %111 = vector.load %arg6[%c0_53, %c0_54] : memref<8x16xf32, #tpu.memory_space<vmem>>, vector<8x16xf32>
      %112 = arith.truncf %111 : vector<8x16xf32> to vector<8x16xbf16>
      %c0_55 = arith.constant 0 : index
      %c0_56 = arith.constant 0 : index
      %c0_57 = arith.constant 0 : index
      %113 = vector.load %arg3[%c0_55, %c0_56, %c0_57] : memref<1x16x48xbf16, #tpu.memory_space<vmem>>, vector<1x16x48xbf16>
      %114 = vector.shape_cast %113 : vector<1x16x48xbf16> to vector<16x48xbf16>
      %cst_58 = arith.constant dense<0.000000e+00> : vector<8x48xf32>
      %115 = tpu.matmul %112, %114, %cst_58 {dimension_numbers = #tpu.dot_dimension_numbers<[1], [0], [0], [1], [0, 0, 1, 1], [], []>} : vector<8x16xbf16>, vector<16x48xbf16>, vector<8x48xf32> -> vector<8x48xf32>
      %116 = vector.extract_strided_slice %110 {offsets = [0, 0], sizes = [8, 16], strides = [1, 1]} : vector<8x48xf32> to vector<8x16xf32>
      %117 = vector.extract_strided_slice %115 {offsets = [0, 0], sizes = [8, 16], strides = [1, 1]} : vector<8x48xf32> to vector<8x16xf32>
      %118 = arith.addf %116, %117 : vector<8x16xf32>
      %119 = arith.negf %118 : vector<8x16xf32>
      %120 = math.exp %119 : vector<8x16xf32>
      %cst_59 = arith.constant 1.000000e+00 : f32
      %121 = vector.broadcast %cst_59 : f32 to vector<8x16xf32>
      %122 = arith.addf %121, %120 : vector<8x16xf32>
      %123 = arith.divf %121, %122 : vector<8x16xf32>
      %124 = vector.extract_strided_slice %110 {offsets = [0, 16], sizes = [8, 16], strides = [1, 1]} : vector<8x48xf32> to vector<8x16xf32>
      %125 = vector.extract_strided_slice %115 {offsets = [0, 16], sizes = [8, 16], strides = [1, 1]} : vector<8x48xf32> to vector<8x16xf32>
      %126 = arith.addf %124, %125 : vector<8x16xf32>
      %127 = arith.negf %126 : vector<8x16xf32>
      %128 = math.exp %127 : vector<8x16xf32>
      %cst_60 = arith.constant 1.000000e+00 : f32
      %129 = vector.broadcast %cst_60 : f32 to vector<8x16xf32>
      %130 = arith.addf %129, %128 : vector<8x16xf32>
      %131 = arith.divf %129, %130 : vector<8x16xf32>
      %132 = vector.extract_strided_slice %110 {offsets = [0, 32], sizes = [8, 16], strides = [1, 1]} : vector<8x48xf32> to vector<8x16xf32>
      %133 = vector.extract_strided_slice %115 {offsets = [0, 32], sizes = [8, 16], strides = [1, 1]} : vector<8x48xf32> to vector<8x16xf32>
      %c0_61 = arith.constant 0 : index
      %c0_62 = arith.constant 0 : index
      %c0_63 = arith.constant 0 : index
      %134 = vector.load %arg4[%c0_61, %c0_62, %c0_63] : memref<1x1x16xf32, #tpu.memory_space<vmem>>, vector<1x1x16xf32>
      %135 = vector.shape_cast %134 : vector<1x1x16xf32> to vector<1x16xf32>
      %136 = vector.broadcast %135 : vector<1x16xf32> to vector<8x16xf32>
      %137 = arith.addf %133, %136 : vector<8x16xf32>
      %138 = arith.mulf %123, %137 : vector<8x16xf32>
      %139 = arith.addf %132, %138 : vector<8x16xf32>
      %140 = math.tanh %139 : vector<8x16xf32>
      %cst_64 = arith.constant 1.000000e+00 : f32
      %141 = vector.broadcast %cst_64 : f32 to vector<8x16xf32>
      %142 = arith.subf %141, %131 : vector<8x16xf32>
      %143 = arith.mulf %142, %140 : vector<8x16xf32>
      %144 = arith.mulf %131, %111 : vector<8x16xf32>
      %145 = arith.addf %143, %144 : vector<8x16xf32>
      %c0_65 = arith.constant 0 : index
      %c0_66 = arith.constant 0 : index
      %146 = vector.load %arg6[%c0_65, %c0_66] : memref<8x16xf32, #tpu.memory_space<vmem>>, vector<8x16xf32>
      tpu.vector_store %arg6[%c0_65, %c0_66], %145 {strides = array<i32>} : memref<8x16xf32, #tpu.memory_space<vmem>>, vector<8x16xf32>,
      %c0_67 = arith.constant 0 : index
      %147 = arith.index_cast %107 : i32 to index
      %c0_68 = arith.constant 0 : index
      %c0_69 = arith.constant 0 : index
      %148 = vector.load %arg5[%c0_67, %147, %c0_68, %c0_69] : memref<1x12x8x16xf32, #tpu.memory_space<vmem>>, vector<1x1x8x16xf32>
      %149 = vector.shape_cast %148 : vector<1x1x8x16xf32> to vector<8x16xf32>
      %150 = vector.shape_cast %145 : vector<8x16xf32> to vector<1x1x8x16xf32>
      tpu.vector_store %arg5[%c0_67, %147, %c0_68, %c0_69], %150 {strides = array<i32>} : memref<1x12x8x16xf32, #tpu.memory_space<vmem>>, vector<1x1x8x16xf32>,
      %c4_i32_70 = arith.constant 4 : i32
      %151 = arith.muli %arg7, %c4_i32_70 : i32
      %c3_i32_71 = arith.constant 3 : i32
      %152 = arith.addi %151, %c3_i32_71 : i32
      %c2_i32_72 = arith.constant 2 : i32
      %153 = arith.muli %c2_i32_72, %152 : i32
      %c11_i32_73 = arith.constant 11 : i32
      %154 = arith.subi %c11_i32_73, %153 : i32
      %155 = arith.muli %arg0, %154 : i32
      %156 = arith.addi %152, %155 : i32
      %c0_74 = arith.constant 0 : index
      %157 = arith.index_cast %156 : i32 to index
      %c0_75 = arith.constant 0 : index
      %c0_76 = arith.constant 0 : index
      %158 = vector.load %arg2[%c0_74, %157, %c0_75, %c0_76] : memref<1x12x8x48xf32, #tpu.memory_space<vmem>>, vector<1x1x8x48xf32>
      %159 = vector.shape_cast %158 : vector<1x1x8x48xf32> to vector<8x48xf32>
      %c0_77 = arith.constant 0 : index
      %c0_78 = arith.constant 0 : index
      %160 = vector.load %arg6[%c0_77, %c0_78] : memref<8x16xf32, #tpu.memory_space<vmem>>, vector<8x16xf32>
      %161 = arith.truncf %160 : vector<8x16xf32> to vector<8x16xbf16>
      %c0_79 = arith.constant 0 : index
      %c0_80 = arith.constant 0 : index
      %c0_81 = arith.constant 0 : index
      %162 = vector.load %arg3[%c0_79, %c0_80, %c0_81] : memref<1x16x48xbf16, #tpu.memory_space<vmem>>, vector<1x16x48xbf16>
      %163 = vector.shape_cast %162 : vector<1x16x48xbf16> to vector<16x48xbf16>
      %cst_82 = arith.constant dense<0.000000e+00> : vector<8x48xf32>
      %164 = tpu.matmul %161, %163, %cst_82 {dimension_numbers = #tpu.dot_dimension_numbers<[1], [0], [0], [1], [0, 0, 1, 1], [], []>} : vector<8x16xbf16>, vector<16x48xbf16>, vector<8x48xf32> -> vector<8x48xf32>
      %165 = vector.extract_strided_slice %159 {offsets = [0, 0], sizes = [8, 16], strides = [1, 1]} : vector<8x48xf32> to vector<8x16xf32>
      %166 = vector.extract_strided_slice %164 {offsets = [0, 0], sizes = [8, 16], strides = [1, 1]} : vector<8x48xf32> to vector<8x16xf32>
      %167 = arith.addf %165, %166 : vector<8x16xf32>
      %168 = arith.negf %167 : vector<8x16xf32>
      %169 = math.exp %168 : vector<8x16xf32>
      %cst_83 = arith.constant 1.000000e+00 : f32
      %170 = vector.broadcast %cst_83 : f32 to vector<8x16xf32>
      %171 = arith.addf %170, %169 : vector<8x16xf32>
      %172 = arith.divf %170, %171 : vector<8x16xf32>
      %173 = vector.extract_strided_slice %159 {offsets = [0, 16], sizes = [8, 16], strides = [1, 1]} : vector<8x48xf32> to vector<8x16xf32>
      %174 = vector.extract_strided_slice %164 {offsets = [0, 16], sizes = [8, 16], strides = [1, 1]} : vector<8x48xf32> to vector<8x16xf32>
      %175 = arith.addf %173, %174 : vector<8x16xf32>
      %176 = arith.negf %175 : vector<8x16xf32>
      %177 = math.exp %176 : vector<8x16xf32>
      %cst_84 = arith.constant 1.000000e+00 : f32
      %178 = vector.broadcast %cst_84 : f32 to vector<8x16xf32>
      %179 = arith.addf %178, %177 : vector<8x16xf32>
      %180 = arith.divf %178, %179 : vector<8x16xf32>
      %181 = vector.extract_strided_slice %159 {offsets = [0, 32], sizes = [8, 16], strides = [1, 1]} : vector<8x48xf32> to vector<8x16xf32>
      %182 = vector.extract_strided_slice %164 {offsets = [0, 32], sizes = [8, 16], strides = [1, 1]} : vector<8x48xf32> to vector<8x16xf32>
      %c0_85 = arith.constant 0 : index
      %c0_86 = arith.constant 0 : index
      %c0_87 = arith.constant 0 : index
      %183 = vector.load %arg4[%c0_85, %c0_86, %c0_87] : memref<1x1x16xf32, #tpu.memory_space<vmem>>, vector<1x1x16xf32>
      %184 = vector.shape_cast %183 : vector<1x1x16xf32> to vector<1x16xf32>
      %185 = vector.broadcast %184 : vector<1x16xf32> to vector<8x16xf32>
      %186 = arith.addf %182, %185 : vector<8x16xf32>
      %187 = arith.mulf %172, %186 : vector<8x16xf32>
      %188 = arith.addf %181, %187 : vector<8x16xf32>
      %189 = math.tanh %188 : vector<8x16xf32>
      %cst_88 = arith.constant 1.000000e+00 : f32
      %190 = vector.broadcast %cst_88 : f32 to vector<8x16xf32>
      %191 = arith.subf %190, %180 : vector<8x16xf32>
      %192 = arith.mulf %191, %189 : vector<8x16xf32>
      %193 = arith.mulf %180, %160 : vector<8x16xf32>
      %194 = arith.addf %192, %193 : vector<8x16xf32>
      %c0_89 = arith.constant 0 : index
      %c0_90 = arith.constant 0 : index
      %195 = vector.load %arg6[%c0_89, %c0_90] : memref<8x16xf32, #tpu.memory_space<vmem>>, vector<8x16xf32>
      tpu.vector_store %arg6[%c0_89, %c0_90], %194 {strides = array<i32>} : memref<8x16xf32, #tpu.memory_space<vmem>>, vector<8x16xf32>,
      %c0_91 = arith.constant 0 : index
      %196 = arith.index_cast %156 : i32 to index
      %c0_92 = arith.constant 0 : index
      %c0_93 = arith.constant 0 : index
      %197 = vector.load %arg5[%c0_91, %196, %c0_92, %c0_93] : memref<1x12x8x16xf32, #tpu.memory_space<vmem>>, vector<1x1x8x16xf32>
      %198 = vector.shape_cast %197 : vector<1x1x8x16xf32> to vector<8x16xf32>
      %199 = vector.shape_cast %194 : vector<8x16xf32> to vector<1x1x8x16xf32>
      tpu.vector_store %arg5[%c0_91, %196, %c0_92, %c0_93], %199 {strides = array<i32>} : memref<1x12x8x16xf32, #tpu.memory_space<vmem>>, vector<1x1x8x16xf32>,
    }
    %c3_i32_2 = arith.constant 3 : i32
    return
  }
  func.func @transform_0(%arg0: i32, %arg1: i32) -> (i32, i32, i32, i32) {
    %c2_i32 = arith.constant 2 : i32
    %0 = arith.muli %c2_i32, %arg1 : i32
    %c0_i32 = arith.constant 0 : i32
    %1 = arith.subi %c0_i32, %0 : i32
    %2 = arith.muli %arg0, %1 : i32
    %3 = arith.addi %arg1, %2 : i32
    %c0_i32_0 = arith.constant 0 : i32
    %c0_i32_1 = arith.constant 0 : i32
    %c0_i32_2 = arith.constant 0 : i32
    return %arg0, %3, %c0_i32_0, %c0_i32_1 : i32, i32, i32, i32
  }
  func.func @transform_1(%arg0: i32, %arg1: i32) -> (i32, i32, i32) {
    %c0_i32 = arith.constant 0 : i32
    %c0_i32_0 = arith.constant 0 : i32
    %c0_i32_1 = arith.constant 0 : i32
    return %arg0, %c0_i32, %c0_i32_0 : i32, i32, i32
  }
  func.func @transform_2(%arg0: i32, %arg1: i32) -> (i32, i32, i32) {
    %c0_i32 = arith.constant 0 : i32
    %c0_i32_0 = arith.constant 0 : i32
    %c0_i32_1 = arith.constant 0 : i32
    return %arg0, %c0_i32, %c0_i32_0 : i32, i32, i32
  }
  func.func @transform_3(%arg0: i32, %arg1: i32) -> (i32, i32, i32, i32) {
    %c2_i32 = arith.constant 2 : i32
    %0 = arith.muli %c2_i32, %arg1 : i32
    %c0_i32 = arith.constant 0 : i32
    %1 = arith.subi %c0_i32, %0 : i32
    %2 = arith.muli %arg0, %1 : i32
    %3 = arith.addi %arg1, %2 : i32
    %c0_i32_0 = arith.constant 0 : i32
    %c0_i32_1 = arith.constant 0 : i32
    %c0_i32_2 = arith.constant 0 : i32
    return %arg0, %3, %c0_i32_0, %c0_i32_1 : i32, i32, i32, i32
  }
}

module attributes {stable_mosaic.version = 11 : i64} {
  func.func @_gru_scan_kernel(%arg0: i32, %arg1: i32, %arg2: memref<1x32x8x96xf32, #tpu.memory_space<vmem>>, %arg3: memref<1x32x96xbf16, #tpu.memory_space<vmem>>, %arg4: memref<1x1x32xf32, #tpu.memory_space<vmem>>, %arg5: memref<1x32x8x32xf32, #tpu.memory_space<vmem>>, %arg6: memref<8x32xf32, #tpu.memory_space<vmem>>) attributes {dimension_semantics = [#tpu.dimension_semantics<parallel>, #tpu.dimension_semantics<arbitrary>], iteration_bounds = array<i64: 1, 1>, scalar_prefetch = 0 : i64, scratch_operands = 1 : i64, tpu.core_type = #tpu.core_type<tc>, window_params = [{transform_indices = @transform_0, window_bounds = array<i64: 1, 32, 8, 96>}, {transform_indices = @transform_1, window_bounds = array<i64: 1, 32, 96>}, {transform_indices = @transform_2, window_bounds = array<i64: 1, 1, 32>}, {transform_indices = @transform_3, window_bounds = array<i64: 1, 32, 8, 32>}]} {
    %c0_i32 = arith.constant 0 : i32
    %0 = arith.cmpi eq, %arg1, %c0_i32 : i32
    %1 = arith.extui %0 : i1 to i32
    %c0_i32_0 = arith.constant 0 : i32
    %2 = arith.cmpi ne, %1, %c0_i32_0 : i32
    scf.if %2 {
      %cst = arith.constant 0.000000e+00 : f32
      %4 = vector.broadcast %cst : f32 to vector<8x32xf32>
      %c0 = arith.constant 0 : index
      %c0_3 = arith.constant 0 : index
      %5 = vector.load %arg6[%c0, %c0_3] : memref<8x32xf32, #tpu.memory_space<vmem>>, vector<8x32xf32>
      tpu.vector_store %arg6[%c0, %c0_3], %4 {strides = array<i32>} : memref<8x32xf32, #tpu.memory_space<vmem>>, vector<8x32xf32>,
    } else {
    }
    %c0_i32_1 = arith.constant 0 : i32
    %c8_i32 = arith.constant 8 : i32
    %3 = arith.addi %c0_i32_1, %c8_i32 : i32
    %c1_i32 = arith.constant 1 : i32
    scf.for %arg7 = %c0_i32_1 to %3 step %c1_i32  : i32 {
      %c4_i32 = arith.constant 4 : i32
      %4 = arith.muli %arg7, %c4_i32 : i32
      %c0_i32_3 = arith.constant 0 : i32
      %5 = arith.addi %4, %c0_i32_3 : i32
      %c2_i32 = arith.constant 2 : i32
      %6 = arith.muli %c2_i32, %5 : i32
      %c31_i32 = arith.constant 31 : i32
      %7 = arith.subi %c31_i32, %6 : i32
      %8 = arith.muli %arg0, %7 : i32
      %9 = arith.addi %5, %8 : i32
      %c0 = arith.constant 0 : index
      %10 = arith.index_cast %9 : i32 to index
      %c0_4 = arith.constant 0 : index
      %c0_5 = arith.constant 0 : index
      %11 = vector.load %arg2[%c0, %10, %c0_4, %c0_5] : memref<1x32x8x96xf32, #tpu.memory_space<vmem>>, vector<1x1x8x96xf32>
      %12 = vector.shape_cast %11 : vector<1x1x8x96xf32> to vector<8x96xf32>
      %c0_6 = arith.constant 0 : index
      %c0_7 = arith.constant 0 : index
      %13 = vector.load %arg6[%c0_6, %c0_7] : memref<8x32xf32, #tpu.memory_space<vmem>>, vector<8x32xf32>
      %14 = arith.truncf %13 : vector<8x32xf32> to vector<8x32xbf16>
      %c0_8 = arith.constant 0 : index
      %c0_9 = arith.constant 0 : index
      %c0_10 = arith.constant 0 : index
      %15 = vector.load %arg3[%c0_8, %c0_9, %c0_10] : memref<1x32x96xbf16, #tpu.memory_space<vmem>>, vector<1x32x96xbf16>
      %16 = vector.shape_cast %15 : vector<1x32x96xbf16> to vector<32x96xbf16>
      %cst = arith.constant dense<0.000000e+00> : vector<8x96xf32>
      %17 = tpu.matmul %14, %16, %cst {dimension_numbers = #tpu.dot_dimension_numbers<[1], [0], [0], [1], [0, 0, 1, 1], [], []>} : vector<8x32xbf16>, vector<32x96xbf16>, vector<8x96xf32> -> vector<8x96xf32>
      %18 = vector.extract_strided_slice %12 {offsets = [0, 0], sizes = [8, 32], strides = [1, 1]} : vector<8x96xf32> to vector<8x32xf32>
      %19 = vector.extract_strided_slice %17 {offsets = [0, 0], sizes = [8, 32], strides = [1, 1]} : vector<8x96xf32> to vector<8x32xf32>
      %20 = arith.addf %18, %19 : vector<8x32xf32>
      %21 = arith.negf %20 : vector<8x32xf32>
      %22 = math.exp %21 : vector<8x32xf32>
      %cst_11 = arith.constant 1.000000e+00 : f32
      %23 = vector.broadcast %cst_11 : f32 to vector<8x32xf32>
      %24 = arith.addf %23, %22 : vector<8x32xf32>
      %25 = arith.divf %23, %24 : vector<8x32xf32>
      %26 = vector.extract_strided_slice %12 {offsets = [0, 32], sizes = [8, 32], strides = [1, 1]} : vector<8x96xf32> to vector<8x32xf32>
      %27 = vector.extract_strided_slice %17 {offsets = [0, 32], sizes = [8, 32], strides = [1, 1]} : vector<8x96xf32> to vector<8x32xf32>
      %28 = arith.addf %26, %27 : vector<8x32xf32>
      %29 = arith.negf %28 : vector<8x32xf32>
      %30 = math.exp %29 : vector<8x32xf32>
      %cst_12 = arith.constant 1.000000e+00 : f32
      %31 = vector.broadcast %cst_12 : f32 to vector<8x32xf32>
      %32 = arith.addf %31, %30 : vector<8x32xf32>
      %33 = arith.divf %31, %32 : vector<8x32xf32>
      %34 = vector.extract_strided_slice %12 {offsets = [0, 64], sizes = [8, 32], strides = [1, 1]} : vector<8x96xf32> to vector<8x32xf32>
      %35 = vector.extract_strided_slice %17 {offsets = [0, 64], sizes = [8, 32], strides = [1, 1]} : vector<8x96xf32> to vector<8x32xf32>
      %c0_13 = arith.constant 0 : index
      %c0_14 = arith.constant 0 : index
      %c0_15 = arith.constant 0 : index
      %36 = vector.load %arg4[%c0_13, %c0_14, %c0_15] : memref<1x1x32xf32, #tpu.memory_space<vmem>>, vector<1x1x32xf32>
      %37 = vector.shape_cast %36 : vector<1x1x32xf32> to vector<1x32xf32>
      %38 = vector.broadcast %37 : vector<1x32xf32> to vector<8x32xf32>
      %39 = arith.addf %35, %38 : vector<8x32xf32>
      %40 = arith.mulf %25, %39 : vector<8x32xf32>
      %41 = arith.addf %34, %40 : vector<8x32xf32>
      %42 = math.tanh %41 : vector<8x32xf32>
      %cst_16 = arith.constant 1.000000e+00 : f32
      %43 = vector.broadcast %cst_16 : f32 to vector<8x32xf32>
      %44 = arith.subf %43, %33 : vector<8x32xf32>
      %45 = arith.mulf %44, %42 : vector<8x32xf32>
      %46 = arith.mulf %33, %13 : vector<8x32xf32>
      %47 = arith.addf %45, %46 : vector<8x32xf32>
      %c0_17 = arith.constant 0 : index
      %c0_18 = arith.constant 0 : index
      %48 = vector.load %arg6[%c0_17, %c0_18] : memref<8x32xf32, #tpu.memory_space<vmem>>, vector<8x32xf32>
      tpu.vector_store %arg6[%c0_17, %c0_18], %47 {strides = array<i32>} : memref<8x32xf32, #tpu.memory_space<vmem>>, vector<8x32xf32>,
      %c0_19 = arith.constant 0 : index
      %49 = arith.index_cast %9 : i32 to index
      %c0_20 = arith.constant 0 : index
      %c0_21 = arith.constant 0 : index
      %50 = vector.load %arg5[%c0_19, %49, %c0_20, %c0_21] : memref<1x32x8x32xf32, #tpu.memory_space<vmem>>, vector<1x1x8x32xf32>
      %51 = vector.shape_cast %50 : vector<1x1x8x32xf32> to vector<8x32xf32>
      %52 = vector.shape_cast %47 : vector<8x32xf32> to vector<1x1x8x32xf32>
      tpu.vector_store %arg5[%c0_19, %49, %c0_20, %c0_21], %52 {strides = array<i32>} : memref<1x32x8x32xf32, #tpu.memory_space<vmem>>, vector<1x1x8x32xf32>,
      %c4_i32_22 = arith.constant 4 : i32
      %53 = arith.muli %arg7, %c4_i32_22 : i32
      %c1_i32_23 = arith.constant 1 : i32
      %54 = arith.addi %53, %c1_i32_23 : i32
      %c2_i32_24 = arith.constant 2 : i32
      %55 = arith.muli %c2_i32_24, %54 : i32
      %c31_i32_25 = arith.constant 31 : i32
      %56 = arith.subi %c31_i32_25, %55 : i32
      %57 = arith.muli %arg0, %56 : i32
      %58 = arith.addi %54, %57 : i32
      %c0_26 = arith.constant 0 : index
      %59 = arith.index_cast %58 : i32 to index
      %c0_27 = arith.constant 0 : index
      %c0_28 = arith.constant 0 : index
      %60 = vector.load %arg2[%c0_26, %59, %c0_27, %c0_28] : memref<1x32x8x96xf32, #tpu.memory_space<vmem>>, vector<1x1x8x96xf32>
      %61 = vector.shape_cast %60 : vector<1x1x8x96xf32> to vector<8x96xf32>
      %c0_29 = arith.constant 0 : index
      %c0_30 = arith.constant 0 : index
      %62 = vector.load %arg6[%c0_29, %c0_30] : memref<8x32xf32, #tpu.memory_space<vmem>>, vector<8x32xf32>
      %63 = arith.truncf %62 : vector<8x32xf32> to vector<8x32xbf16>
      %c0_31 = arith.constant 0 : index
      %c0_32 = arith.constant 0 : index
      %c0_33 = arith.constant 0 : index
      %64 = vector.load %arg3[%c0_31, %c0_32, %c0_33] : memref<1x32x96xbf16, #tpu.memory_space<vmem>>, vector<1x32x96xbf16>
      %65 = vector.shape_cast %64 : vector<1x32x96xbf16> to vector<32x96xbf16>
      %cst_34 = arith.constant dense<0.000000e+00> : vector<8x96xf32>
      %66 = tpu.matmul %63, %65, %cst_34 {dimension_numbers = #tpu.dot_dimension_numbers<[1], [0], [0], [1], [0, 0, 1, 1], [], []>} : vector<8x32xbf16>, vector<32x96xbf16>, vector<8x96xf32> -> vector<8x96xf32>
      %67 = vector.extract_strided_slice %61 {offsets = [0, 0], sizes = [8, 32], strides = [1, 1]} : vector<8x96xf32> to vector<8x32xf32>
      %68 = vector.extract_strided_slice %66 {offsets = [0, 0], sizes = [8, 32], strides = [1, 1]} : vector<8x96xf32> to vector<8x32xf32>
      %69 = arith.addf %67, %68 : vector<8x32xf32>
      %70 = arith.negf %69 : vector<8x32xf32>
      %71 = math.exp %70 : vector<8x32xf32>
      %cst_35 = arith.constant 1.000000e+00 : f32
      %72 = vector.broadcast %cst_35 : f32 to vector<8x32xf32>
      %73 = arith.addf %72, %71 : vector<8x32xf32>
      %74 = arith.divf %72, %73 : vector<8x32xf32>
      %75 = vector.extract_strided_slice %61 {offsets = [0, 32], sizes = [8, 32], strides = [1, 1]} : vector<8x96xf32> to vector<8x32xf32>
      %76 = vector.extract_strided_slice %66 {offsets = [0, 32], sizes = [8, 32], strides = [1, 1]} : vector<8x96xf32> to vector<8x32xf32>
      %77 = arith.addf %75, %76 : vector<8x32xf32>
      %78 = arith.negf %77 : vector<8x32xf32>
      %79 = math.exp %78 : vector<8x32xf32>
      %cst_36 = arith.constant 1.000000e+00 : f32
      %80 = vector.broadcast %cst_36 : f32 to vector<8x32xf32>
      %81 = arith.addf %80, %79 : vector<8x32xf32>
      %82 = arith.divf %80, %81 : vector<8x32xf32>
      %83 = vector.extract_strided_slice %61 {offsets = [0, 64], sizes = [8, 32], strides = [1, 1]} : vector<8x96xf32> to vector<8x32xf32>
      %84 = vector.extract_strided_slice %66 {offsets = [0, 64], sizes = [8, 32], strides = [1, 1]} : vector<8x96xf32> to vector<8x32xf32>
      %c0_37 = arith.constant 0 : index
      %c0_38 = arith.constant 0 : index
      %c0_39 = arith.constant 0 : index
      %85 = vector.load %arg4[%c0_37, %c0_38, %c0_39] : memref<1x1x32xf32, #tpu.memory_space<vmem>>, vector<1x1x32xf32>
      %86 = vector.shape_cast %85 : vector<1x1x32xf32> to vector<1x32xf32>
      %87 = vector.broadcast %86 : vector<1x32xf32> to vector<8x32xf32>
      %88 = arith.addf %84, %87 : vector<8x32xf32>
      %89 = arith.mulf %74, %88 : vector<8x32xf32>
      %90 = arith.addf %83, %89 : vector<8x32xf32>
      %91 = math.tanh %90 : vector<8x32xf32>
      %cst_40 = arith.constant 1.000000e+00 : f32
      %92 = vector.broadcast %cst_40 : f32 to vector<8x32xf32>
      %93 = arith.subf %92, %82 : vector<8x32xf32>
      %94 = arith.mulf %93, %91 : vector<8x32xf32>
      %95 = arith.mulf %82, %62 : vector<8x32xf32>
      %96 = arith.addf %94, %95 : vector<8x32xf32>
      %c0_41 = arith.constant 0 : index
      %c0_42 = arith.constant 0 : index
      %97 = vector.load %arg6[%c0_41, %c0_42] : memref<8x32xf32, #tpu.memory_space<vmem>>, vector<8x32xf32>
      tpu.vector_store %arg6[%c0_41, %c0_42], %96 {strides = array<i32>} : memref<8x32xf32, #tpu.memory_space<vmem>>, vector<8x32xf32>,
      %c0_43 = arith.constant 0 : index
      %98 = arith.index_cast %58 : i32 to index
      %c0_44 = arith.constant 0 : index
      %c0_45 = arith.constant 0 : index
      %99 = vector.load %arg5[%c0_43, %98, %c0_44, %c0_45] : memref<1x32x8x32xf32, #tpu.memory_space<vmem>>, vector<1x1x8x32xf32>
      %100 = vector.shape_cast %99 : vector<1x1x8x32xf32> to vector<8x32xf32>
      %101 = vector.shape_cast %96 : vector<8x32xf32> to vector<1x1x8x32xf32>
      tpu.vector_store %arg5[%c0_43, %98, %c0_44, %c0_45], %101 {strides = array<i32>} : memref<1x32x8x32xf32, #tpu.memory_space<vmem>>, vector<1x1x8x32xf32>,
      %c4_i32_46 = arith.constant 4 : i32
      %102 = arith.muli %arg7, %c4_i32_46 : i32
      %c2_i32_47 = arith.constant 2 : i32
      %103 = arith.addi %102, %c2_i32_47 : i32
      %c2_i32_48 = arith.constant 2 : i32
      %104 = arith.muli %c2_i32_48, %103 : i32
      %c31_i32_49 = arith.constant 31 : i32
      %105 = arith.subi %c31_i32_49, %104 : i32
      %106 = arith.muli %arg0, %105 : i32
      %107 = arith.addi %103, %106 : i32
      %c0_50 = arith.constant 0 : index
      %108 = arith.index_cast %107 : i32 to index
      %c0_51 = arith.constant 0 : index
      %c0_52 = arith.constant 0 : index
      %109 = vector.load %arg2[%c0_50, %108, %c0_51, %c0_52] : memref<1x32x8x96xf32, #tpu.memory_space<vmem>>, vector<1x1x8x96xf32>
      %110 = vector.shape_cast %109 : vector<1x1x8x96xf32> to vector<8x96xf32>
      %c0_53 = arith.constant 0 : index
      %c0_54 = arith.constant 0 : index
      %111 = vector.load %arg6[%c0_53, %c0_54] : memref<8x32xf32, #tpu.memory_space<vmem>>, vector<8x32xf32>
      %112 = arith.truncf %111 : vector<8x32xf32> to vector<8x32xbf16>
      %c0_55 = arith.constant 0 : index
      %c0_56 = arith.constant 0 : index
      %c0_57 = arith.constant 0 : index
      %113 = vector.load %arg3[%c0_55, %c0_56, %c0_57] : memref<1x32x96xbf16, #tpu.memory_space<vmem>>, vector<1x32x96xbf16>
      %114 = vector.shape_cast %113 : vector<1x32x96xbf16> to vector<32x96xbf16>
      %cst_58 = arith.constant dense<0.000000e+00> : vector<8x96xf32>
      %115 = tpu.matmul %112, %114, %cst_58 {dimension_numbers = #tpu.dot_dimension_numbers<[1], [0], [0], [1], [0, 0, 1, 1], [], []>} : vector<8x32xbf16>, vector<32x96xbf16>, vector<8x96xf32> -> vector<8x96xf32>
      %116 = vector.extract_strided_slice %110 {offsets = [0, 0], sizes = [8, 32], strides = [1, 1]} : vector<8x96xf32> to vector<8x32xf32>
      %117 = vector.extract_strided_slice %115 {offsets = [0, 0], sizes = [8, 32], strides = [1, 1]} : vector<8x96xf32> to vector<8x32xf32>
      %118 = arith.addf %116, %117 : vector<8x32xf32>
      %119 = arith.negf %118 : vector<8x32xf32>
      %120 = math.exp %119 : vector<8x32xf32>
      %cst_59 = arith.constant 1.000000e+00 : f32
      %121 = vector.broadcast %cst_59 : f32 to vector<8x32xf32>
      %122 = arith.addf %121, %120 : vector<8x32xf32>
      %123 = arith.divf %121, %122 : vector<8x32xf32>
      %124 = vector.extract_strided_slice %110 {offsets = [0, 32], sizes = [8, 32], strides = [1, 1]} : vector<8x96xf32> to vector<8x32xf32>
      %125 = vector.extract_strided_slice %115 {offsets = [0, 32], sizes = [8, 32], strides = [1, 1]} : vector<8x96xf32> to vector<8x32xf32>
      %126 = arith.addf %124, %125 : vector<8x32xf32>
      %127 = arith.negf %126 : vector<8x32xf32>
      %128 = math.exp %127 : vector<8x32xf32>
      %cst_60 = arith.constant 1.000000e+00 : f32
      %129 = vector.broadcast %cst_60 : f32 to vector<8x32xf32>
      %130 = arith.addf %129, %128 : vector<8x32xf32>
      %131 = arith.divf %129, %130 : vector<8x32xf32>
      %132 = vector.extract_strided_slice %110 {offsets = [0, 64], sizes = [8, 32], strides = [1, 1]} : vector<8x96xf32> to vector<8x32xf32>
      %133 = vector.extract_strided_slice %115 {offsets = [0, 64], sizes = [8, 32], strides = [1, 1]} : vector<8x96xf32> to vector<8x32xf32>
      %c0_61 = arith.constant 0 : index
      %c0_62 = arith.constant 0 : index
      %c0_63 = arith.constant 0 : index
      %134 = vector.load %arg4[%c0_61, %c0_62, %c0_63] : memref<1x1x32xf32, #tpu.memory_space<vmem>>, vector<1x1x32xf32>
      %135 = vector.shape_cast %134 : vector<1x1x32xf32> to vector<1x32xf32>
      %136 = vector.broadcast %135 : vector<1x32xf32> to vector<8x32xf32>
      %137 = arith.addf %133, %136 : vector<8x32xf32>
      %138 = arith.mulf %123, %137 : vector<8x32xf32>
      %139 = arith.addf %132, %138 : vector<8x32xf32>
      %140 = math.tanh %139 : vector<8x32xf32>
      %cst_64 = arith.constant 1.000000e+00 : f32
      %141 = vector.broadcast %cst_64 : f32 to vector<8x32xf32>
      %142 = arith.subf %141, %131 : vector<8x32xf32>
      %143 = arith.mulf %142, %140 : vector<8x32xf32>
      %144 = arith.mulf %131, %111 : vector<8x32xf32>
      %145 = arith.addf %143, %144 : vector<8x32xf32>
      %c0_65 = arith.constant 0 : index
      %c0_66 = arith.constant 0 : index
      %146 = vector.load %arg6[%c0_65, %c0_66] : memref<8x32xf32, #tpu.memory_space<vmem>>, vector<8x32xf32>
      tpu.vector_store %arg6[%c0_65, %c0_66], %145 {strides = array<i32>} : memref<8x32xf32, #tpu.memory_space<vmem>>, vector<8x32xf32>,
      %c0_67 = arith.constant 0 : index
      %147 = arith.index_cast %107 : i32 to index
      %c0_68 = arith.constant 0 : index
      %c0_69 = arith.constant 0 : index
      %148 = vector.load %arg5[%c0_67, %147, %c0_68, %c0_69] : memref<1x32x8x32xf32, #tpu.memory_space<vmem>>, vector<1x1x8x32xf32>
      %149 = vector.shape_cast %148 : vector<1x1x8x32xf32> to vector<8x32xf32>
      %150 = vector.shape_cast %145 : vector<8x32xf32> to vector<1x1x8x32xf32>
      tpu.vector_store %arg5[%c0_67, %147, %c0_68, %c0_69], %150 {strides = array<i32>} : memref<1x32x8x32xf32, #tpu.memory_space<vmem>>, vector<1x1x8x32xf32>,
      %c4_i32_70 = arith.constant 4 : i32
      %151 = arith.muli %arg7, %c4_i32_70 : i32
      %c3_i32 = arith.constant 3 : i32
      %152 = arith.addi %151, %c3_i32 : i32
      %c2_i32_71 = arith.constant 2 : i32
      %153 = arith.muli %c2_i32_71, %152 : i32
      %c31_i32_72 = arith.constant 31 : i32
      %154 = arith.subi %c31_i32_72, %153 : i32
      %155 = arith.muli %arg0, %154 : i32
      %156 = arith.addi %152, %155 : i32
      %c0_73 = arith.constant 0 : index
      %157 = arith.index_cast %156 : i32 to index
      %c0_74 = arith.constant 0 : index
      %c0_75 = arith.constant 0 : index
      %158 = vector.load %arg2[%c0_73, %157, %c0_74, %c0_75] : memref<1x32x8x96xf32, #tpu.memory_space<vmem>>, vector<1x1x8x96xf32>
      %159 = vector.shape_cast %158 : vector<1x1x8x96xf32> to vector<8x96xf32>
      %c0_76 = arith.constant 0 : index
      %c0_77 = arith.constant 0 : index
      %160 = vector.load %arg6[%c0_76, %c0_77] : memref<8x32xf32, #tpu.memory_space<vmem>>, vector<8x32xf32>
      %161 = arith.truncf %160 : vector<8x32xf32> to vector<8x32xbf16>
      %c0_78 = arith.constant 0 : index
      %c0_79 = arith.constant 0 : index
      %c0_80 = arith.constant 0 : index
      %162 = vector.load %arg3[%c0_78, %c0_79, %c0_80] : memref<1x32x96xbf16, #tpu.memory_space<vmem>>, vector<1x32x96xbf16>
      %163 = vector.shape_cast %162 : vector<1x32x96xbf16> to vector<32x96xbf16>
      %cst_81 = arith.constant dense<0.000000e+00> : vector<8x96xf32>
      %164 = tpu.matmul %161, %163, %cst_81 {dimension_numbers = #tpu.dot_dimension_numbers<[1], [0], [0], [1], [0, 0, 1, 1], [], []>} : vector<8x32xbf16>, vector<32x96xbf16>, vector<8x96xf32> -> vector<8x96xf32>
      %165 = vector.extract_strided_slice %159 {offsets = [0, 0], sizes = [8, 32], strides = [1, 1]} : vector<8x96xf32> to vector<8x32xf32>
      %166 = vector.extract_strided_slice %164 {offsets = [0, 0], sizes = [8, 32], strides = [1, 1]} : vector<8x96xf32> to vector<8x32xf32>
      %167 = arith.addf %165, %166 : vector<8x32xf32>
      %168 = arith.negf %167 : vector<8x32xf32>
      %169 = math.exp %168 : vector<8x32xf32>
      %cst_82 = arith.constant 1.000000e+00 : f32
      %170 = vector.broadcast %cst_82 : f32 to vector<8x32xf32>
      %171 = arith.addf %170, %169 : vector<8x32xf32>
      %172 = arith.divf %170, %171 : vector<8x32xf32>
      %173 = vector.extract_strided_slice %159 {offsets = [0, 32], sizes = [8, 32], strides = [1, 1]} : vector<8x96xf32> to vector<8x32xf32>
      %174 = vector.extract_strided_slice %164 {offsets = [0, 32], sizes = [8, 32], strides = [1, 1]} : vector<8x96xf32> to vector<8x32xf32>
      %175 = arith.addf %173, %174 : vector<8x32xf32>
      %176 = arith.negf %175 : vector<8x32xf32>
      %177 = math.exp %176 : vector<8x32xf32>
      %cst_83 = arith.constant 1.000000e+00 : f32
      %178 = vector.broadcast %cst_83 : f32 to vector<8x32xf32>
      %179 = arith.addf %178, %177 : vector<8x32xf32>
      %180 = arith.divf %178, %179 : vector<8x32xf32>
      %181 = vector.extract_strided_slice %159 {offsets = [0, 64], sizes = [8, 32], strides = [1, 1]} : vector<8x96xf32> to vector<8x32xf32>
      %182 = vector.extract_strided_slice %164 {offsets = [0, 64], sizes = [8, 32], strides = [1, 1]} : vector<8x96xf32> to vector<8x32xf32>
      %c0_84 = arith.constant 0 : index
      %c0_85 = arith.constant 0 : index
      %c0_86 = arith.constant 0 : index
      %183 = vector.load %arg4[%c0_84, %c0_85, %c0_86] : memref<1x1x32xf32, #tpu.memory_space<vmem>>, vector<1x1x32xf32>
      %184 = vector.shape_cast %183 : vector<1x1x32xf32> to vector<1x32xf32>
      %185 = vector.broadcast %184 : vector<1x32xf32> to vector<8x32xf32>
      %186 = arith.addf %182, %185 : vector<8x32xf32>
      %187 = arith.mulf %172, %186 : vector<8x32xf32>
      %188 = arith.addf %181, %187 : vector<8x32xf32>
      %189 = math.tanh %188 : vector<8x32xf32>
      %cst_87 = arith.constant 1.000000e+00 : f32
      %190 = vector.broadcast %cst_87 : f32 to vector<8x32xf32>
      %191 = arith.subf %190, %180 : vector<8x32xf32>
      %192 = arith.mulf %191, %189 : vector<8x32xf32>
      %193 = arith.mulf %180, %160 : vector<8x32xf32>
      %194 = arith.addf %192, %193 : vector<8x32xf32>
      %c0_88 = arith.constant 0 : index
      %c0_89 = arith.constant 0 : index
      %195 = vector.load %arg6[%c0_88, %c0_89] : memref<8x32xf32, #tpu.memory_space<vmem>>, vector<8x32xf32>
      tpu.vector_store %arg6[%c0_88, %c0_89], %194 {strides = array<i32>} : memref<8x32xf32, #tpu.memory_space<vmem>>, vector<8x32xf32>,
      %c0_90 = arith.constant 0 : index
      %196 = arith.index_cast %156 : i32 to index
      %c0_91 = arith.constant 0 : index
      %c0_92 = arith.constant 0 : index
      %197 = vector.load %arg5[%c0_90, %196, %c0_91, %c0_92] : memref<1x32x8x32xf32, #tpu.memory_space<vmem>>, vector<1x1x8x32xf32>
      %198 = vector.shape_cast %197 : vector<1x1x8x32xf32> to vector<8x32xf32>
      %199 = vector.shape_cast %194 : vector<8x32xf32> to vector<1x1x8x32xf32>
      tpu.vector_store %arg5[%c0_90, %196, %c0_91, %c0_92], %199 {strides = array<i32>} : memref<1x32x8x32xf32, #tpu.memory_space<vmem>>, vector<1x1x8x32xf32>,
    }
    %c8_i32_2 = arith.constant 8 : i32
    return
  }
  func.func @transform_0(%arg0: i32, %arg1: i32) -> (i32, i32, i32, i32) {
    %c2_i32 = arith.constant 2 : i32
    %0 = arith.muli %c2_i32, %arg1 : i32
    %c0_i32 = arith.constant 0 : i32
    %1 = arith.subi %c0_i32, %0 : i32
    %2 = arith.muli %arg0, %1 : i32
    %3 = arith.addi %arg1, %2 : i32
    %c0_i32_0 = arith.constant 0 : i32
    %c0_i32_1 = arith.constant 0 : i32
    %c0_i32_2 = arith.constant 0 : i32
    return %arg0, %3, %c0_i32_0, %c0_i32_1 : i32, i32, i32, i32
  }
  func.func @transform_1(%arg0: i32, %arg1: i32) -> (i32, i32, i32) {
    %c0_i32 = arith.constant 0 : i32
    %c0_i32_0 = arith.constant 0 : i32
    %c0_i32_1 = arith.constant 0 : i32
    return %arg0, %c0_i32, %c0_i32_0 : i32, i32, i32
  }
  func.func @transform_2(%arg0: i32, %arg1: i32) -> (i32, i32, i32) {
    %c0_i32 = arith.constant 0 : i32
    %c0_i32_0 = arith.constant 0 : i32
    %c0_i32_1 = arith.constant 0 : i32
    return %arg0, %c0_i32, %c0_i32_0 : i32, i32, i32
  }
  func.func @transform_3(%arg0: i32, %arg1: i32) -> (i32, i32, i32, i32) {
    %c2_i32 = arith.constant 2 : i32
    %0 = arith.muli %c2_i32, %arg1 : i32
    %c0_i32 = arith.constant 0 : i32
    %1 = arith.subi %c0_i32, %0 : i32
    %2 = arith.muli %arg0, %1 : i32
    %3 = arith.addi %arg1, %2 : i32
    %c0_i32_0 = arith.constant 0 : i32
    %c0_i32_1 = arith.constant 0 : i32
    %c0_i32_2 = arith.constant 0 : i32
    return %arg0, %3, %c0_i32_0, %c0_i32_1 : i32, i32, i32, i32
  }
}

module attributes {stable_mosaic.version = 11 : i64} {
  func.func @_mlp_kernel(%arg0: i32, %arg1: memref<256x32xbf16, #tpu.memory_space<vmem>>, %arg2: memref<32x32xbf16, #tpu.memory_space<vmem>>, %arg3: memref<1x32xf32, #tpu.memory_space<vmem>>, %arg4: memref<32x16xbf16, #tpu.memory_space<vmem>>, %arg5: memref<1x16xf32, #tpu.memory_space<vmem>>, %arg6: memref<256x16xf32, #tpu.memory_space<vmem>>) attributes {dimension_semantics = [#tpu.dimension_semantics<parallel>], iteration_bounds = array<i64: 1>, scalar_prefetch = 0 : i64, scratch_operands = 0 : i64, tpu.core_type = #tpu.core_type<tc>, window_params = [{transform_indices = @transform_0, window_bounds = array<i64: 256, 32>}, {pipeline_mode = #tpu.pipeline_mode<synchronous>, transform_indices = @transform_1, window_bounds = array<i64: 32, 32>}, {pipeline_mode = #tpu.pipeline_mode<synchronous>, transform_indices = @transform_2, window_bounds = array<i64: 1, 32>}, {pipeline_mode = #tpu.pipeline_mode<synchronous>, transform_indices = @transform_3, window_bounds = array<i64: 32, 16>}, {pipeline_mode = #tpu.pipeline_mode<synchronous>, transform_indices = @transform_4, window_bounds = array<i64: 1, 16>}, {transform_indices = @transform_5, window_bounds = array<i64: 256, 16>}]} {
    %c0 = arith.constant 0 : index
    %c0_0 = arith.constant 0 : index
    %0 = vector.load %arg1[%c0, %c0_0] : memref<256x32xbf16, #tpu.memory_space<vmem>>, vector<256x32xbf16>
    %c0_1 = arith.constant 0 : index
    %c0_2 = arith.constant 0 : index
    %1 = vector.load %arg2[%c0_1, %c0_2] : memref<32x32xbf16, #tpu.memory_space<vmem>>, vector<32x32xbf16>
    %cst = arith.constant dense<0.000000e+00> : vector<256x32xf32>
    %2 = tpu.matmul %0, %1, %cst {dimension_numbers = #tpu.dot_dimension_numbers<[1], [0], [0], [1], [0, 0, 1, 1], [], []>} : vector<256x32xbf16>, vector<32x32xbf16>, vector<256x32xf32> -> vector<256x32xf32>
    %c0_3 = arith.constant 0 : index
    %c0_4 = arith.constant 0 : index
    %3 = vector.load %arg3[%c0_3, %c0_4] : memref<1x32xf32, #tpu.memory_space<vmem>>, vector<1x32xf32>
    %4 = vector.broadcast %3 : vector<1x32xf32> to vector<256x32xf32>
    %5 = arith.addf %2, %4 : vector<256x32xf32>
    %cst_5 = arith.constant 0.000000e+00 : f32
    %6 = vector.broadcast %cst_5 : f32 to vector<256x32xf32>
    %7 = arith.maximumf %5, %6 : vector<256x32xf32>
    %8 = arith.truncf %7 : vector<256x32xf32> to vector<256x32xbf16>
    %c0_6 = arith.constant 0 : index
    %c0_7 = arith.constant 0 : index
    %9 = vector.load %arg4[%c0_6, %c0_7] : memref<32x16xbf16, #tpu.memory_space<vmem>>, vector<32x16xbf16>
    %cst_8 = arith.constant dense<0.000000e+00> : vector<256x16xf32>
    %10 = tpu.matmul %8, %9, %cst_8 {dimension_numbers = #tpu.dot_dimension_numbers<[1], [0], [0], [1], [0, 0, 1, 1], [], []>} : vector<256x32xbf16>, vector<32x16xbf16>, vector<256x16xf32> -> vector<256x16xf32>
    %c0_9 = arith.constant 0 : index
    %c0_10 = arith.constant 0 : index
    %11 = vector.load %arg5[%c0_9, %c0_10] : memref<1x16xf32, #tpu.memory_space<vmem>>, vector<1x16xf32>
    %12 = vector.broadcast %11 : vector<1x16xf32> to vector<256x16xf32>
    %13 = arith.addf %10, %12 : vector<256x16xf32>
    %c0_11 = arith.constant 0 : index
    %c0_12 = arith.constant 0 : index
    %14 = vector.load %arg6[%c0_11, %c0_12] : memref<256x16xf32, #tpu.memory_space<vmem>>, vector<256x16xf32>
    tpu.vector_store %arg6[%c0_11, %c0_12], %13 {strides = array<i32>} : memref<256x16xf32, #tpu.memory_space<vmem>>, vector<256x16xf32>,
    return
  }
  func.func @transform_0(%arg0: i32) -> (i32, i32) {
    %c0_i32 = arith.constant 0 : i32
    %c0_i32_0 = arith.constant 0 : i32
    return %arg0, %c0_i32 : i32, i32
  }
  func.func @transform_1(%arg0: i32) -> (i32, i32) {
    %c0_i32 = arith.constant 0 : i32
    %c0_i32_0 = arith.constant 0 : i32
    %c0_i32_1 = arith.constant 0 : i32
    return %c0_i32, %c0_i32_0 : i32, i32
  }
  func.func @transform_2(%arg0: i32) -> (i32, i32) {
    %c0_i32 = arith.constant 0 : i32
    %c0_i32_0 = arith.constant 0 : i32
    %c0_i32_1 = arith.constant 0 : i32
    return %c0_i32, %c0_i32_0 : i32, i32
  }
  func.func @transform_3(%arg0: i32) -> (i32, i32) {
    %c0_i32 = arith.constant 0 : i32
    %c0_i32_0 = arith.constant 0 : i32
    %c0_i32_1 = arith.constant 0 : i32
    return %c0_i32, %c0_i32_0 : i32, i32
  }
  func.func @transform_4(%arg0: i32) -> (i32, i32) {
    %c0_i32 = arith.constant 0 : i32
    %c0_i32_0 = arith.constant 0 : i32
    %c0_i32_1 = arith.constant 0 : i32
    return %c0_i32, %c0_i32_0 : i32, i32
  }
  func.func @transform_5(%arg0: i32) -> (i32, i32) {
    %c0_i32 = arith.constant 0 : i32
    %c0_i32_0 = arith.constant 0 : i32
    return %arg0, %c0_i32 : i32, i32
  }
}

</mosaic_0001>

<bundles_post_ra>
// kernel: vocoder_forward.4
= control target key start
LH: loop header
LB: loop body
LE: loop exit
PB: predicated region body
PF: predicated region fallthrough
CT: control target
= control target key end

     0   :  { %s1121_s12 = smov 0   ;;  %s1123_s13 = smov 0   ;;  %s1291_s0 = inlined_call_operand.vmem [shape: f32[2,12,8,48], index: 0, kind: input, shape index: {}]   ;;  %s1292_s1 = inlined_call_operand.vmem [shape: bf16[2,16,48], index: 1, kind: input, shape index: {}]   ;;  %s1293_s2 = inlined_call_operand.vmem [shape: f32[2,1,16], index: 2, kind: input, shape index: {}]   ;;  %s1294_s3 = inlined_call_operand.vmem [shape: f32[2,12,8,16], index: 3, kind: output, shape index: {}]  }
   0x1   :  { %s1125_s14 = smov 0  }
   0x2 LB: > { %s25_s15 = sadd.s32 1, %s1084_s13  ;;  %p905_p0 = scmp.ge.s32.totalorder %s1088_s14, 1  ;;  %s1088_s14 = sphi %s1125_s14, %s13_s14   ;;  %s1084_s13 = sphi %s1123_s13, %s1296_s13   ;;  %s1080_s12 = sphi %s1121_s12, %s1295_s12  }
   0x3   : > { %p27_p1 = scmp.ge.s32.totalorder %s25_s15, 2  ;;  %p200_p2 = scmp.lt.s32.totalorder %s1088_s14, 3 }
   0x5   : > { %s1298_s15 = smov (%p27_p1, %s25_s15), 0  ;;  %p201_p3 = pnand %p905_p0, %p200_p2 }
   0x6   : > { %p253_p4 = scmp.lt.s32.totalorder (!%p201_p3), %s1080_s12, 1  ;;  %vm297_vm0 = vcmask (!%p201_p3), 130048   ;;  %v1094_v0 = vmov (!%p201_p3), 0.0   ;;  %s1167_s4 = smov (!%p201_p3), 0  }
   0x7   : > { %204 = sbr.rel (%p201_p3) target bundleno = 2827 (0xb0b), region = 32  ;;  %298 = vst.msk [vmem:[#allocation2] sm:$0xff] (!%p201_p3), %vm297_vm0, %v1094_v0 }
   0xe   : > { %s1144_s16 = scalar_select %p253_p4, %s1080_s12, 1 }
  0x10   : > { %s994_s17 = smul.u32 96, %s1144_s16  ;;  %s952_s18 = sshll.u32 %s1144_s16, 3 }
  0x11   : > { %s1151_s21 = scalar_lea.vmem %s1292_s1, %s952_s18  ;;  %s273_s24 = scalar_lea.vmem %s1293_s2, %s1144_s16 }
  0x12   : > { %s1160_s27 = scalar_lea.vmem %s1291_s0, %s994_s17  ;;  %s1165_s30 = scalar_lea.vmem %s1294_s3, %s994_s17 }
  0x13 LB: >> { %v1034_v1 = vld [vmem:[%s1151_s21] sm:$0xff]   ;;  %v1095_v2 = vmov 0.0   ;;  %vm1096_vm1 = vmmov 0   ;;  %s1097_s7 = smov 32   ;;  %s1098_s8 = smov 96   ;;  %s1092_s4 = sphi %s1167_s4, %s304_s4  }
  0x14   : >> { %970 = vmatprep.subr.bf16.mxu0 %v1095_v2  ;;  %v313_v3 = vld [vmem:[#allocation2] sm:$0xff]  ;;  %976 = vmatprep.subr.bf16.mxu1 %v1095_v2  ;;  %s1099_s9 = smov 16   ;;  %s1197_s10 = sshll.u32 %s1092_s4, 3 }
  0x15   : >> { %v1179_v4 = vld [vmem:[%s273_s24] ss:$0 sm:$0xff]  ;;  %971 = vmatpush3.bf16.msra.mxu0 %v1034_v1  ;;  %972 = vmatprep.mubr.msk.bf16.mxu0 %vm1096_vm1, %v1095_v2  ;;  %v314_v5 = vpack.c.bf16 %v313_v3, %v313_v3  ;;  %s307_s11 = ssub.s32 11, %s1197_s10  ;;  %s1202_s18 = sshll.u32 %s1092_s4, 2 }
  0x16   : >> { %380 = vrot.lane.b32.xlu0 %v1179_v4, %s1097_s7  ;;  %978 = vmatprep.mubr.msk.bf16.mxu1 %vm1096_vm1, %v1095_v2  ;;  %s308_s17 = smul.u32 %s1080_s12, %s307_s11  ;;  %s1100_s23 = smov 112   ;;  %v1035_v23 = vld [vmem:[%s1151_s21] sm:$0xff]  }
  0x17   : >> { %982 = vmatprep.subr.bf16.mxu0 %v1095_v2  ;;  %977 = vmatpush3.bf16.msra.mxu1 %v1035_v23  ;;  %s954_s26 = sadd.s32 2, %s1197_s10  ;;  %v1036_v50 = vld [vmem:[%s1151_s21] sm:$0xff]   ;;  %s304_s4 = sadd.s32 1, %s1092_s4  }
  0x18   : >> { %973 = vmatmul.mubr.msk.bf16.vlgmr.msra.gmra.mrb[0].mxu0 %vm297_vm0, %v314_v5  ;;  %s309_s19 = sadd.s32 %s1202_s18, %s308_s17  ;;  %988 = vmatprep.subr.bf16.mxu1 %v1095_v2  ;;  %s416_s28 = ssub.s32 11, %s954_s26 }
  0x19   : >> { %984 = vmatprep.mubr.msk.bf16.mxu0 %vm1096_vm1, %v1095_v2  ;;  %s1205_s20 = sshll.u32 %s309_s19, 3  ;;  %s417_s29 = smul.u32 %s1080_s12, %s416_s28  ;;  %983 = vmatpush3.bf16.msra.mxu0 %v1036_v50 }
  0x1a   : >> { %s311_s22 = scalar_lea.vmem %s1160_s27, %s1205_s20  ;;  %s412_s25 = scalar_lea.vmem %s1165_s30, %s1205_s20 }
  0x1b   : >> { %v312_v12 = vld [vmem:[%s311_s22] sm:$0xff]  ;;  %s1225_s5 = sadd.s32 %s1202_s18, %s417_s29  ;;  %s956_s19 = sadd.s32 4, %s1197_s10 }
  0x1c   : >> { %s919_s6 = sshll.u32 %s1225_s5, 3  ;;  %s524_s20 = ssub.s32 11, %s956_s19 }
  0x1d   : >> { %s820_s11 = scalar_lea.vmem %s1160_s27, %s919_s6  ;;  %s825_s17 = scalar_lea.vmem %s1165_s30, %s919_s6 }
  0x1e   : >> { %v920_v39 = vld [vmem:[%s820_s11 + $0x8] sm:$0xff]  ;;  %s525_s22 = smul.u32 %s1080_s12, %s524_s20  ;;  %s958_s5 = sadd.s32 6, %s1197_s10 }
  0x1f   : >> { %s632_s6 = ssub.s32 11, %s958_s5  ;;  %p301_p5 = scmp.ge.s32.totalorder %s304_s4, 3  }
  0x20   : >> { %s633_s11 = smul.u32 %s1080_s12, %s632_s6 }
  0x88   : >> { %v381_v6 = vpop.permute.xlu0 %380 }
  0xeb   : >> { %v361_v7 = vpop.f32.mrb[0].mxu0 }
  0xec   : >> { %v383_v8 = vadd.f32 %v381_v6, %v361_v7  ;;  %v974_v9 = vpop.f32.mrb[1].mxu0  ;;  %v367_v13 = vadd.f32 %v361_v7, %v312_v12 }
  0xed   : >> { %v364_v10 = vpop.f32.mrb[2].mxu0 }
  0xee   : >> { %385 = vrot.lane.b32.xlu0 %v383_v8, %s1098_s8  ;;  %v975_v11 = vpop.f32.mrb[3].mxu0  ;;  %v915_v14 = vmul.f32 -1.442695, %v367_v13 }
  0xf0   : >> { %1038 = vpow2.f32 %v915_v14  ;;  %v1037_v14 = vld [vmem:[%s1151_s21] sm:$0xff]  }
  0xf2   : >> { %402 = vrot.lane.b32.xlu0 %v313_v3, %s1099_s9 }
  0xf6   : >> { %488 = vrot.lane.b32.xlu0 %v1179_v4, %s1097_s7 }
  0xfa   : >> { %v1039_v15 = vpop.eup %1038 }
  0xfb   : >> { %v371_v16 = vadd.f32 1.0, %v1039_v15 }
  0xfd   : >> { %1040 = vrcp.f32 %v371_v16 }
 0x107   : >> { %v1041_v17 = vpop.eup %1040 }
 0x108   : >> { %v395_v25 = vsub.f32 1.0, %v1041_v17 }
 0x160   : >> { %v386_v18 = vpop.permute.xlu0 %385 }
 0x161   : >> { %v388_v19 = vmul.f32 %v1041_v17, %v386_v18 }
 0x163   : >> { %390 = vrot.lane.b32.xlu1 %v388_v19, %s1097_s7 }
 0x164   : >> { %v403_v24 = vpop.permute.xlu0 %402 }
 0x165   : >> { %v405_v27 = vmul.f32 %v1041_v17, %v403_v24 }
 0x168   : >> { %v489_v33 = vpop.permute.xlu0 %488 }
 0x1d5   : >> { %v391_v20 = vpop.permute.xlu1 %390 }
 0x1d6   : >> { %v393_v21 = vadd.f32 %v391_v20, %v312_v12 }
 0x1d8   : >> { %1042 = vtanh.f32 %v393_v21 }
 0x1e2   : >> { %v1043_v22 = vpop.eup %1042 }
 0x1e3   : >> { %397 = vrot.lane.b32.xlu1 %v1043_v22, %s1100_s23 }
 0x255   : >> { %v398_v26 = vpop.permute.xlu1 %397 }
 0x256   : >> { %v400_v28 = vmul.f32 %v398_v26, %v395_v25 }
 0x258   : >> { %v406_v29 = vadd.f32 %v405_v27, %v400_v28 }
 0x25a   : >> { %408 = vrot.lane.b32.xlu1 %v406_v29, %s1100_s23 }
 0x2cc   : >> { %v409_v30 = vpop.permute.xlu1 %408 }
 0x2cd   : >> { %411 = vst.msk [vmem:[#allocation2] sm:$0xff] %vm297_vm0, %v409_v30  ;;  %413 = vst.msk [vmem:[%s412_s25] sm:$0xff] %vm297_vm0, %v409_v30  ;;  %s1248_s25 = sadd.s32 %s1202_s18, %s525_s22 }
 0x2ce   : >> { %s930_s26 = sshll.u32 %s1248_s25, 3 }
 0x2cf   : >> { %s830_s28 = scalar_lea.vmem %s1160_s27, %s930_s26  ;;  %s835_s29 = scalar_lea.vmem %s1165_s30, %s930_s26 }
 0x2d4   : >> { %v422_v31 = vld [vmem:[#allocation2] sm:$0xff] }
 0x2d5   : >> { %v423_v32 = vpack.c.bf16 %v422_v31, %v422_v31 }
 0x2d7   : >> { %979 = vmatmul.mubr.msk.bf16.vlgmr.msra.gmra.mrb[0].mxu1 %vm297_vm0, %v423_v32 }
 0x2d8   : >> { %990 = vmatprep.mubr.msk.bf16.mxu1 %vm1096_vm1, %v1095_v2  ;;  %v931_v2 = vld [vmem:[%s830_s28 + $0x10] sm:$0xff]  ;;  %989 = vmatpush3.bf16.msra.mxu1 %v1037_v14 }
 0x3aa   : >> { %v469_v34 = vpop.f32.mrb[0].mxu1 }
 0x3ab   : >> { %v491_v35 = vadd.f32 %v489_v33, %v469_v34  ;;  %v980_v36 = vpop.f32.mrb[1].mxu1  ;;  %v475_v40 = vadd.f32 %v920_v39, %v469_v34 }
 0x3ac   : >> { %v472_v37 = vpop.f32.mrb[2].mxu1 }
 0x3ad   : >> { %493 = vrot.lane.b32.xlu1 %v491_v35, %s1098_s8  ;;  %v981_v38 = vpop.f32.mrb[3].mxu1  ;;  %v923_v41 = vmul.f32 -1.442695, %v475_v40 }
 0x3af   : >> { %1044 = vpow2.f32 %v923_v41 }
 0x3b9   : >> { %v1045_v42 = vpop.eup %1044 }
 0x3ba   : >> { %v479_v43 = vadd.f32 1.0, %v1045_v42 }
 0x3bc   : >> { %1046 = vrcp.f32 %v479_v43 }
 0x3c6   : >> { %v1047_v44 = vpop.eup %1046 }
 0x3c7   : >> { %v503_v52 = vsub.f32 1.0, %v1047_v44 }
 0x41f   : >> { %v494_v45 = vpop.permute.xlu1 %493 }
 0x420   : >> { %v496_v46 = vmul.f32 %v1047_v44, %v494_v45 }
 0x422   : >> { %498 = vrot.lane.b32.xlu0 %v496_v46, %s1097_s7 }
 0x426   : >> { %510 = vrot.lane.b32.xlu0 %v422_v31, %s1099_s9 }
 0x42a   : >> { %596 = vrot.lane.b32.xlu0 %v1179_v4, %s1097_s7 }
 0x494   : >> { %v499_v47 = vpop.permute.xlu0 %498 }
 0x495   : >> { %v501_v48 = vadd.f32 %v920_v39, %v499_v47 }
 0x497   : >> { %1048 = vtanh.f32 %v501_v48 }
 0x498   : >> { %v511_v51 = vpop.permute.xlu0 %510 }
 0x499   : >> { %v513_v54 = vmul.f32 %v1047_v44, %v511_v51 }
 0x49c   : >> { %v597_v60 = vpop.permute.xlu0 %596 }
 0x4a1   : >> { %v1049_v49 = vpop.eup %1048 }
 0x4a2   : >> { %505 = vrot.lane.b32.xlu1 %v1049_v49, %s1100_s23 }
 0x514   : >> { %v506_v53 = vpop.permute.xlu1 %505 }
 0x515   : >> { %v508_v55 = vmul.f32 %v506_v53, %v503_v52 }
 0x517   : >> { %v514_v56 = vadd.f32 %v513_v54, %v508_v55 }
 0x519   : >> { %516 = vrot.lane.b32.xlu1 %v514_v56, %s1100_s23 }
 0x58b   : >> { %v517_v57 = vpop.permute.xlu1 %516 }
 0x58c   : >> { %519 = vst.msk [vmem:[#allocation2] sm:$0xff] %vm297_vm0, %v517_v57  ;;  %927 = vst.msk [vmem:[%s825_s17 + $0x8] sm:$0xff] %vm297_vm0, %v517_v57  ;;  %s838_s17 = sadd.s32 %s1202_s18, %s633_s11 }
 0x58d   : >> { %s941_s19 = sshll.u32 %s838_s17, 3 }
 0x58e   : >> { %s840_s20 = scalar_lea.vmem %s1160_s27, %s941_s19 }
 0x58f   : >> { %v942_v29 = vld [vmem:[%s840_s20 + $0x18] sm:$0xff] }
 0x593   : >> { %v530_v58 = vld [vmem:[#allocation2] sm:$0xff] }
 0x594   : >> { %v531_v59 = vpack.c.bf16 %v530_v58, %v530_v58 }
 0x596   : >> { %985 = vmatmul.mubr.msk.bf16.vlgmr.msra.gmra.mrb[4].mxu0 %vm297_vm0, %v531_v59 }
 0x669   : >> { %v577_v61 = vpop.f32.mrb[4].mxu0 }
 0x66a   : >> { %v599_v62 = vadd.f32 %v597_v60, %v577_v61  ;;  %v986_v63 = vpop.f32.mrb[5].mxu0  ;;  %v583_v3 = vadd.f32 %v931_v2, %v577_v61 }
 0x66b   : >> { %v580_v0 = vpop.f32.mrb[6].mxu0 }
 0x66c   : >> { %v987_v1 = vpop.f32.mrb[7].mxu0  ;;  %601 = vrot.lane.b32.xlu1 %v599_v62, %s1098_s8  ;;  %v934_v5 = vmul.f32 -1.442695, %v583_v3 }
 0x66e   : >> { %1050 = vpow2.f32 %v934_v5 }
 0x678   : >> { %v1051_v6 = vpop.eup %1050 }
 0x679   : >> { %v587_v7 = vadd.f32 1.0, %v1051_v6 }
 0x67b   : >> { %1052 = vrcp.f32 %v587_v7 }
 0x685   : >> { %v1053_v8 = vpop.eup %1052 }
 0x686   : >> { %v611_v16 = vsub.f32 1.0, %v1053_v8 }
 0x6de   : >> { %v602_v9 = vpop.permute.xlu1 %601 }
 0x6df   : >> { %v604_v10 = vmul.f32 %v1053_v8, %v602_v9 }
 0x6e1   : >> { %606 = vrot.lane.b32.xlu0 %v604_v10, %s1097_s7 }
 0x6e5   : >> { %618 = vrot.lane.b32.xlu0 %v530_v58, %s1099_s9 }
 0x6e9   : >> { %704 = vrot.lane.b32.xlu0 %v1179_v4, %s1097_s7 }
 0x753   : >> { %v607_v11 = vpop.permute.xlu0 %606 }
 0x754   : >> { %v609_v12 = vadd.f32 %v931_v2, %v607_v11 }
 0x756   : >> { %1054 = vtanh.f32 %v609_v12 }
 0x757   : >> { %v619_v15 = vpop.permute.xlu0 %618 }
 0x758   : >> { %v621_v18 = vmul.f32 %v1053_v8, %v619_v15 }
 0x75b   : >> { %v705_v23 = vpop.permute.xlu0 %704 }
 0x760   : >> { %v1055_v13 = vpop.eup %1054 }
 0x761   : >> { %613 = vrot.lane.b32.xlu1 %v1055_v13, %s1100_s23 }
 0x7d3   : >> { %v614_v17 = vpop.permute.xlu1 %613 }
 0x7d4   : >> { %v616_v19 = vmul.f32 %v614_v17, %v611_v16 }
 0x7d6   : >> { %v622_v20 = vadd.f32 %v621_v18, %v616_v19 }
 0x7d8   : >> { %624 = vrot.lane.b32.xlu1 %v622_v20, %s1100_s23 }
 0x84a   : >> { %v625_v4 = vpop.permute.xlu1 %624 }
 0x84b   : >> { %627 = vst.msk [vmem:[#allocation2] sm:$0xff] %vm297_vm0, %v625_v4  ;;  %938 = vst.msk [vmem:[%s835_s29 + $0x10] sm:$0xff] %vm297_vm0, %v625_v4 }
 0x852   : >> { %v638_v21 = vld [vmem:[#allocation2] sm:$0xff] }
 0x853   : >> { %v639_v22 = vpack.c.bf16 %v638_v21, %v638_v21 }
 0x855   : >> { %991 = vmatmul.mubr.msk.bf16.vlgmr.msra.gmra.mrb[4].mxu1 %vm297_vm0, %v639_v22 }
 0x928   : >> { %v685_v24 = vpop.f32.mrb[4].mxu1 }
 0x929   : >> { %v707_v25 = vadd.f32 %v705_v23, %v685_v24  ;;  %v992_v26 = vpop.f32.mrb[5].mxu1  ;;  %v691_v30 = vadd.f32 %v942_v29, %v685_v24 }
 0x92a   : >> { %v688_v27 = vpop.f32.mrb[6].mxu1 }
 0x92b   : >> { %709 = vrot.lane.b32.xlu1 %v707_v25, %s1098_s8  ;;  %v993_v28 = vpop.f32.mrb[7].mxu1  ;;  %v945_v31 = vmul.f32 -1.442695, %v691_v30  ;;  %s845_s8 = scalar_lea.vmem %s1165_s30, %s941_s19 }
 0x92d   : >> { %1056 = vpow2.f32 %v945_v31 }
 0x937   : >> { %v1057_v32 = vpop.eup %1056 }
 0x938   : >> { %v695_v33 = vadd.f32 1.0, %v1057_v32 }
 0x93a   : >> { %1058 = vrcp.f32 %v695_v33 }
 0x944   : >> { %v1059_v34 = vpop.eup %1058 }
 0x945   : >> { %v719_v41 = vsub.f32 1.0, %v1059_v34 }
 0x99d   : >> { %v710_v35 = vpop.permute.xlu1 %709 }
 0x99e   : >> { %v712_v36 = vmul.f32 %v1059_v34, %v710_v35 }
 0x9a0   : >> { %714 = vrot.lane.b32.xlu0 %v712_v36, %s1097_s7 }
 0x9a4   : >> { %726 = vrot.lane.b32.xlu0 %v638_v21, %s1099_s9 }
 0xa12   : >> { %v715_v37 = vpop.permute.xlu0 %714 }
 0xa13   : >> { %v717_v38 = vadd.f32 %v942_v29, %v715_v37 }
 0xa15   : >> { %1060 = vtanh.f32 %v717_v38 }
 0xa16   : >> { %v727_v40 = vpop.permute.xlu0 %726 }
 0xa17   : >> { %v729_v43 = vmul.f32 %v1059_v34, %v727_v40 }
 0xa1f   : >> { %v1061_v39 = vpop.eup %1060 }
 0xa20   : >> { %721 = vrot.lane.b32.xlu1 %v1061_v39, %s1100_s23 }
 0xa92   : >> { %v722_v42 = vpop.permute.xlu1 %721 }
 0xa93   : >> { %v724_v44 = vmul.f32 %v722_v42, %v719_v41 }
 0xa95   : >> { %v730_v45 = vadd.f32 %v729_v43, %v724_v44 }
 0xa97   : >> { %732 = vrot.lane.b32.xlu1 %v730_v45, %s1100_s23 }
 0xb04   : > { %303 = sbr.rel (!%p301_p5) target bundleno = 19 (0x13), region = 87 }
 0xb09   : >> { %v733_v46 = vpop.permute.xlu1 %732 }
 0xb0a   : >> { %735 = vst.msk [vmem:[#allocation2] sm:$0xff] %vm297_vm0, %v733_v46  ;;  %949 = vst.msk [vmem:[%s845_s8 + $0x18] sm:$0xff] %vm297_vm0, %v733_v46 }
 0xb0b PF: > { %s13_s14 = sadd.s32 1, %s1088_s14   ;;  %s1295_s12 = smov %s1084_s13 }
 0xb0c   : > { %p10_p6 = scmp.ge.s32.totalorder %s13_s14, 4   ;;  %s1296_s13 = smov %s1298_s15 }
 0xb0e   :  { %12 = sbr.rel (!%p10_p6) target bundleno = 2 (0x2), region = 98 }

// kernel: vocoder_forward.6
= control target key start
LH: loop header
LB: loop body
LE: loop exit
PB: predicated region body
PF: predicated region fallthrough
CT: control target
= control target key end

     0   :  { %vm79_vm0 = vcmask 261120   ;;  %v799_v0 = vmov 0.0   ;;  %s826_s12 = smov 0   ;;  %s942_s0 = inlined_call_operand.vmem [shape: f32[1,32,8,96], index: 0, kind: input, shape index: {}]   ;;  %s943_s1 = inlined_call_operand.vmem [shape: bf16[1,32,96], index: 1, kind: input, shape index: {}]   ;;  %s944_s2 = inlined_call_operand.vmem [shape: f32[1,1,32], index: 2, kind: input, shape index: {}]   ;;  %s945_s3 = inlined_call_operand.vmem [shape: f32[1,32,8,32], index: 3, kind: output, shape index: {}]  }
   0x1   :  { %80 = vst.msk [vmem:[#allocation2] sm:$0xff] %vm79_vm0, %v799_v0 }
   0x2 LB: > { %v759_v1 = vld [vmem:[%s943_s1] sm:$0xff]   ;;  %v800_v2 = vmov 0.0   ;;  %v760_v3 = vld [vmem:[%s943_s1 + $0x8] sm:$0xff]   ;;  %vm801_vm1 = vmmov 0   ;;  %s802_s19 = smov 64   ;;  %s803_s20 = smov 32   ;;  %s797_s12 = sphi %s826_s12, %s86_s12  }
   0x3   : > { %713 = vmatprep.subr.bf16.mxu0 %v800_v2  ;;  %721 = vmatprep.subr.bf16.mxu1 %v800_v2  ;;  %v844_v5 = vld [vmem:[%s944_s2] ss:$0 sm:$0xff]  ;;  %s688_s21 = sshll.u32 %s797_s12, 5  ;;  %s804_s25 = smov 96   ;;  %v762_v25 = vld [vmem:[%s943_s1 + $0x8] sm:$0xff]  }
   0x4   : > { %714 = vmatpush3.bf16.msra.mxu0 %v759_v1  ;;  %717 = vmatprep.mubr.msk.bf16.mxu0 %vm801_vm1, %v800_v2  ;;  %s865_s24 = scalar_lea.vmem %s942_s0, %s688_s21  ;;  %v761_v24 = vld [vmem:[%s943_s1] sm:$0xff]   ;;  %s884_s5 = scalar_lea.vmem %s945_s3, %s688_s21  ;;  %v764_v53 = vld [vmem:[%s943_s1 + $0x8] sm:$0xff]  }
   0x5   : > { %715 = vmatprep.subr.bf16.mxu0 %v800_v2  ;;  %170 = vrot.lane.b32.xlu0 %v844_v5, %s802_s19  ;;  %v94_v13 = vld [vmem:[%s865_s24] sm:$0xff]  ;;  %v655_v41 = vld [vmem:[%s865_s24 + $0x8] sm:$0xff]  ;;  %s86_s12 = sadd.s32 1, %s797_s12  }
   0x6   : > { %725 = vmatprep.mubr.msk.bf16.mxu1 %vm801_vm1, %v800_v2  ;;  %722 = vmatpush3.bf16.msra.mxu1 %v761_v24  ;;  %v763_v52 = vld [vmem:[%s943_s1] sm:$0xff]   ;;  %p83_p0 = scmp.ge.s32.totalorder %s86_s12, 8  }
   0x7   : > { %723 = vmatprep.subr.bf16.mxu1 %v800_v2 }
   0x8   : > { %v95_v4 = vld [vmem:[#allocation2] sm:$0xff]  ;;  %716 = vmatpush3.bf16.msra.mxu0 %v760_v3 }
   0x9   : > { %v96_v6 = vpack.c.bf16 %v95_v4, %v95_v4  ;;  %729 = vmatprep.subr.bf16.mxu0 %v800_v2 }
   0xa   : > { %724 = vmatpush3.bf16.msra.mxu1 %v762_v25 }
   0xb   : > { %718 = vmatmul.mubr.msk.bf16.vlgmr.msra.gmra.mrb[0].mxu0 %vm79_vm0, %v96_v6  ;;  %737 = vmatprep.subr.bf16.mxu1 %v800_v2 }
   0xc   : > { %733 = vmatprep.mubr.msk.bf16.mxu0 %vm801_vm1, %v800_v2  ;;  %730 = vmatpush3.bf16.msra.mxu0 %v763_v52 }
   0xd   : > { %731 = vmatprep.subr.bf16.mxu0 %v800_v2 }
  0x10   : > { %732 = vmatpush3.bf16.msra.mxu0 %v764_v53 }
  0x77   : > { %v171_v7 = vpop.permute.xlu0 %170 }
  0xde   : > { %v151_v8 = vpop.f32.mrb[0].mxu0 }
  0xdf   : > { %v173_v9 = vadd.f32 %v171_v7, %v151_v8  ;;  %v719_v10 = vpop.f32.mrb[1].mxu0  ;;  %v157_v14 = vadd.f32 %v151_v8, %v94_v13  ;;  %v667_v7 = vld [vmem:[%s865_s24 + $0x10] sm:$0xff] }
  0xe0   : > { %v154_v11 = vpop.f32.mrb[2].mxu0 }
  0xe1   : > { %175 = vrot.lane.b32.xlu0 %v173_v9, %s802_s19  ;;  %v720_v12 = vpop.f32.mrb[3].mxu0  ;;  %v650_v15 = vmul.f32 -1.442695, %v157_v14 }
  0xe3   : > { %767 = vpow2.f32 %v650_v15 }
  0xe5   : > { %192 = vrot.lane.b32.xlu0 %v95_v4, %s803_s20 }
  0xe9   : > { %286 = vrot.lane.b32.xlu0 %v844_v5, %s802_s19 }
  0xed   : > { %v768_v16 = vpop.eup %767 }
  0xee   : > { %v161_v17 = vadd.f32 1.0, %v768_v16 }
  0xf0   : > { %769 = vrcp.f32 %v161_v17 }
  0xfa   : > { %v770_v18 = vpop.eup %769 }
  0xfb   : > { %v185_v27 = vsub.f32 1.0, %v770_v18 }
 0x153   : > { %v176_v19 = vpop.permute.xlu0 %175 }
 0x154   : > { %v178_v20 = vmul.f32 %v770_v18, %v176_v19  ;;  %v766_v19 = vld [vmem:[%s943_s1 + $0x8] sm:$0xff]  }
 0x156   : > { %180 = vrot.lane.b32.xlu1 %v178_v20, %s802_s19 }
 0x157   : > { %v193_v26 = vpop.permute.xlu0 %192 }
 0x158   : > { %v195_v29 = vmul.f32 %v770_v18, %v193_v26  ;;  %v765_v18 = vld [vmem:[%s943_s1] sm:$0xff]  }
 0x15b   : > { %v287_v35 = vpop.permute.xlu0 %286 }
 0x1c8   : > { %v181_v21 = vpop.permute.xlu1 %180 }
 0x1c9   : > { %v183_v22 = vadd.f32 %v181_v21, %v94_v13 }
 0x1cb   : > { %771 = vtanh.f32 %v183_v22 }
 0x1d5   : > { %v772_v23 = vpop.eup %771 }
 0x1d6   : > { %187 = vrot.lane.b32.xlu1 %v772_v23, %s804_s25 }
 0x248   : > { %v188_v28 = vpop.permute.xlu1 %187 }
 0x249   : > { %v190_v30 = vmul.f32 %v188_v28, %v185_v27 }
 0x24b   : > { %v196_v31 = vadd.f32 %v195_v29, %v190_v30 }
 0x24d   : > { %198 = vrot.lane.b32.xlu1 %v196_v31, %s804_s25 }
 0x2bf   : > { %v199_v32 = vpop.permute.xlu1 %198 }
 0x2c0   : > { %201 = vst.msk [vmem:[#allocation2] sm:$0xff] %vm79_vm0, %v199_v32  ;;  %203 = vst.msk [vmem:[%s884_s5] sm:$0xff] %vm79_vm0, %v199_v32 }
 0x2c7   : > { %v212_v33 = vld [vmem:[#allocation2] sm:$0xff] }
 0x2c8   : > { %v213_v34 = vpack.c.bf16 %v212_v33, %v212_v33 }
 0x2ca   : > { %726 = vmatmul.mubr.msk.bf16.vlgmr.msra.gmra.mrb[0].mxu1 %vm79_vm0, %v213_v34 }
 0x2cb   : > { %741 = vmatprep.mubr.msk.bf16.mxu1 %vm801_vm1, %v800_v2  ;;  %738 = vmatpush3.bf16.msra.mxu1 %v765_v18 }
 0x2cc   : > { %739 = vmatprep.subr.bf16.mxu1 %v800_v2 }
 0x2cf   : > { %740 = vmatpush3.bf16.msra.mxu1 %v766_v19 }
 0x39d   : > { %v267_v36 = vpop.f32.mrb[0].mxu1 }
 0x39e   : > { %v289_v37 = vadd.f32 %v287_v35, %v267_v36  ;;  %v727_v38 = vpop.f32.mrb[1].mxu1  ;;  %v273_v42 = vadd.f32 %v655_v41, %v267_v36 }
 0x39f   : > { %v270_v39 = vpop.f32.mrb[2].mxu1 }
 0x3a0   : > { %291 = vrot.lane.b32.xlu1 %v289_v37, %s802_s19  ;;  %v728_v40 = vpop.f32.mrb[3].mxu1  ;;  %v659_v43 = vmul.f32 -1.442695, %v273_v42 }
 0x3a2   : > { %773 = vpow2.f32 %v659_v43 }
 0x3ac   : > { %v774_v44 = vpop.eup %773 }
 0x3ad   : > { %v277_v45 = vadd.f32 1.0, %v774_v44 }
 0x3af   : > { %775 = vrcp.f32 %v277_v45 }
 0x3b9   : > { %v776_v46 = vpop.eup %775 }
 0x3ba   : > { %v301_v55 = vsub.f32 1.0, %v776_v46 }
 0x412   : > { %v292_v47 = vpop.permute.xlu1 %291 }
 0x413   : > { %v294_v48 = vmul.f32 %v776_v46, %v292_v47 }
 0x415   : > { %296 = vrot.lane.b32.xlu0 %v294_v48, %s802_s19 }
 0x419   : > { %308 = vrot.lane.b32.xlu0 %v212_v33, %s803_s20  ;;  %v679_v33 = vld [vmem:[%s865_s24 + $0x18] sm:$0xff] }
 0x41d   : > { %402 = vrot.lane.b32.xlu0 %v844_v5, %s802_s19 }
 0x487   : > { %v297_v49 = vpop.permute.xlu0 %296 }
 0x488   : > { %v299_v50 = vadd.f32 %v655_v41, %v297_v49 }
 0x48a   : > { %777 = vtanh.f32 %v299_v50 }
 0x48b   : > { %v309_v54 = vpop.permute.xlu0 %308 }
 0x48c   : > { %v311_v57 = vmul.f32 %v776_v46, %v309_v54 }
 0x48f   : > { %v403_v63 = vpop.permute.xlu0 %402 }
 0x494   : > { %v778_v51 = vpop.eup %777 }
 0x495   : > { %303 = vrot.lane.b32.xlu1 %v778_v51, %s804_s25 }
 0x507   : > { %v304_v56 = vpop.permute.xlu1 %303 }
 0x508   : > { %v306_v58 = vmul.f32 %v304_v56, %v301_v55 }
 0x50a   : > { %v312_v59 = vadd.f32 %v311_v57, %v306_v58 }
 0x50c   : > { %314 = vrot.lane.b32.xlu1 %v312_v59, %s804_s25 }
 0x57e   : > { %v315_v60 = vpop.permute.xlu1 %314 }
 0x57f   : > { %317 = vst.msk [vmem:[#allocation2] sm:$0xff] %vm79_vm0, %v315_v60  ;;  %663 = vst.msk [vmem:[%s884_s5 + $0x8] sm:$0xff] %vm79_vm0, %v315_v60 }
 0x586   : > { %v328_v61 = vld [vmem:[#allocation2] sm:$0xff] }
 0x587   : > { %v329_v62 = vpack.c.bf16 %v328_v61, %v328_v61 }
 0x589   : > { %734 = vmatmul.mubr.msk.bf16.vlgmr.msra.gmra.mrb[4].mxu0 %vm79_vm0, %v329_v62 }
 0x65c   : > { %v383_v0 = vpop.f32.mrb[4].mxu0 }
 0x65d   : > { %v405_v1 = vadd.f32 %v403_v63, %v383_v0  ;;  %v735_v3 = vpop.f32.mrb[5].mxu0  ;;  %v389_v8 = vadd.f32 %v667_v7, %v383_v0 }
 0x65e   : > { %v386_v4 = vpop.f32.mrb[6].mxu0 }
 0x65f   : > { %v736_v6 = vpop.f32.mrb[7].mxu0  ;;  %407 = vrot.lane.b32.xlu1 %v405_v1, %s802_s19  ;;  %v671_v9 = vmul.f32 -1.442695, %v389_v8 }
 0x661   : > { %779 = vpow2.f32 %v671_v9 }
 0x66b   : > { %v780_v10 = vpop.eup %779 }
 0x66c   : > { %v393_v11 = vadd.f32 1.0, %v780_v10 }
 0x66e   : > { %781 = vrcp.f32 %v393_v11 }
 0x678   : > { %v782_v12 = vpop.eup %781 }
 0x6d1   : > { %v408_v13 = vpop.permute.xlu1 %407 }
 0x6d2   : > { %v410_v14 = vmul.f32 %v782_v12, %v408_v13 }
 0x6d4   : > { %412 = vrot.lane.b32.xlu0 %v410_v14, %s802_s19 }
 0x6d8   : > { %424 = vrot.lane.b32.xlu0 %v328_v61, %s803_s20 }
 0x6dc   : > { %518 = vrot.lane.b32.xlu0 %v844_v5, %s802_s19  ;;  %v417_v5 = vsub.f32 1.0, %v782_v12 }
 0x746   : > { %v413_v15 = vpop.permute.xlu0 %412 }
 0x747   : > { %v415_v16 = vadd.f32 %v667_v7, %v413_v15 }
 0x749   : > { %783 = vtanh.f32 %v415_v16 }
 0x74a   : > { %v425_v20 = vpop.permute.xlu0 %424 }
 0x74b   : > { %v427_v22 = vmul.f32 %v782_v12, %v425_v20 }
 0x74e   : > { %v519_v2 = vpop.permute.xlu0 %518 }
 0x753   : > { %v784_v17 = vpop.eup %783 }
 0x754   : > { %419 = vrot.lane.b32.xlu1 %v784_v17, %s804_s25 }
 0x7c6   : > { %v420_v21 = vpop.permute.xlu1 %419 }
 0x7c7   : > { %v422_v23 = vmul.f32 %v420_v21, %v417_v5 }
 0x7c9   : > { %v428_v24 = vadd.f32 %v427_v22, %v422_v23 }
 0x7cb   : > { %430 = vrot.lane.b32.xlu1 %v428_v24, %s804_s25 }
 0x83d   : > { %v431_v25 = vpop.permute.xlu1 %430 }
 0x83e   : > { %433 = vst.msk [vmem:[#allocation2] sm:$0xff] %vm79_vm0, %v431_v25  ;;  %675 = vst.msk [vmem:[%s884_s5 + $0x10] sm:$0xff] %vm79_vm0, %v431_v25 }
 0x845   : > { %v444_v26 = vld [vmem:[#allocation2] sm:$0xff] }
 0x846   : > { %v445_v27 = vpack.c.bf16 %v444_v26, %v444_v26 }
 0x848   : > { %742 = vmatmul.mubr.msk.bf16.vlgmr.msra.gmra.mrb[4].mxu1 %vm79_vm0, %v445_v27 }
 0x91b   : > { %v499_v28 = vpop.f32.mrb[4].mxu1 }
 0x91c   : > { %v521_v29 = vadd.f32 %v519_v2, %v499_v28  ;;  %v743_v30 = vpop.f32.mrb[5].mxu1  ;;  %v505_v34 = vadd.f32 %v679_v33, %v499_v28 }
 0x91d   : > { %v502_v31 = vpop.f32.mrb[6].mxu1 }
 0x91e   : > { %523 = vrot.lane.b32.xlu1 %v521_v29, %s802_s19  ;;  %v744_v32 = vpop.f32.mrb[7].mxu1  ;;  %v683_v35 = vmul.f32 -1.442695, %v505_v34 }
 0x920   : > { %785 = vpow2.f32 %v683_v35 }
 0x92a   : > { %v786_v36 = vpop.eup %785 }
 0x92b   : > { %v509_v37 = vadd.f32 1.0, %v786_v36 }
 0x92d   : > { %787 = vrcp.f32 %v509_v37 }
 0x937   : > { %v788_v38 = vpop.eup %787 }
 0x938   : > { %v533_v45 = vsub.f32 1.0, %v788_v38 }
 0x990   : > { %v524_v39 = vpop.permute.xlu1 %523 }
 0x991   : > { %v526_v40 = vmul.f32 %v788_v38, %v524_v39 }
 0x993   : > { %528 = vrot.lane.b32.xlu0 %v526_v40, %s802_s19 }
 0x997   : > { %540 = vrot.lane.b32.xlu0 %v444_v26, %s803_s20 }
 0xa05   : > { %v529_v41 = vpop.permute.xlu0 %528 }
 0xa06   : > { %v531_v42 = vadd.f32 %v679_v33, %v529_v41 }
 0xa08   : > { %789 = vtanh.f32 %v531_v42 }
 0xa09   : > { %v541_v44 = vpop.permute.xlu0 %540 }
 0xa0a   : > { %v543_v47 = vmul.f32 %v788_v38, %v541_v44 }
 0xa12   : > { %v790_v43 = vpop.eup %789 }
 0xa13   : > { %535 = vrot.lane.b32.xlu1 %v790_v43, %s804_s25 }
 0xa85   : > { %v536_v46 = vpop.permute.xlu1 %535 }
 0xa86   : > { %v538_v48 = vmul.f32 %v536_v46, %v533_v45 }
 0xa88   : > { %v544_v49 = vadd.f32 %v543_v47, %v538_v48 }
 0xa8a   : > { %546 = vrot.lane.b32.xlu1 %v544_v49, %s804_s25 }
 0xaf7   :  { %85 = sbr.rel (!%p83_p0) target bundleno = 2 (0x2), region = 58 }
 0xafc   : > { %v547_v50 = vpop.permute.xlu1 %546 }
 0xafd   : > { %549 = vst.msk [vmem:[#allocation2] sm:$0xff] %vm79_vm0, %v547_v50  ;;  %687 = vst.msk [vmem:[%s884_s5 + $0x18] sm:$0xff] %vm79_vm0, %v547_v50 }

// kernel: vocoder_forward.7
= control target key start
LH: loop header
LB: loop body
LE: loop exit
PB: predicated region body
PF: predicated region fallthrough
CT: control target
= control target key end

     0   :  { %vm156_vm0 = vcmask 261120   ;;  %vm646_vm1 = vcmask 130048   ;;  %s1189_s1 = inlined_call_operand.vmem [shape: bf16[32,32], index: 1, kind: input, shape index: {}]   ;;  %s1190_s0 = inlined_call_operand.vmem [shape: bf16[256,32], index: 0, kind: input, shape index: {}]   ;;  %s1191_s3 = inlined_call_operand.vmem [shape: bf16[32,16], index: 3, kind: input, shape index: {}]   ;;  %s1192_s2 = inlined_call_operand.vmem [shape: f32[1,32], index: 2, kind: input, shape index: {}]   ;;  %s1193_s4 = inlined_call_operand.vmem [shape: f32[1,16], index: 4, kind: input, shape index: {}]   ;;  %s1194_s5 = inlined_call_operand.vmem [shape: f32[256,16], index: 5, kind: output, shape index: {}]  }
   0x1   :  { %v845_v0 = vld [vmem:[%s1189_s1] sm:$0xff]   ;;  %v846_v1 = vld [vmem:[%s1189_s1 + $0x8] sm:$0xff]   ;;  %v849_v4 = vld [vmem:[%s1190_s0 + $0x10] sm:$0xff]  }
   0x2   :  { %773 = vmatprep.subr.bf16.mxu0 %v845_v0  ;;  %v847_v2 = vld [vmem:[%s1190_s0] sm:$0xff]   ;;  %v848_v3 = vld [vmem:[%s1190_s0 + $0x8] sm:$0xff]   ;;  %v850_v5 = vld [vmem:[%s1190_s0 + $0x18] sm:$0xff]  }
   0x3   :  { %774 = vmatpush3.bf16.msra.mxu0 %v845_v0  ;;  %777 = vmatprep.mubr.msk.bf16.mxu0 %vm156_vm0, %v847_v2  ;;  %v851_v6 = vld [vmem:[%s1190_s0 + $0x20] sm:$0xff]   ;;  %v852_v7 = vld [vmem:[%s1190_s0 + $0x28] sm:$0xff]   ;;  %v853_v8 = vld [vmem:[%s1190_s0 + $0x30] sm:$0xff]  }
   0x4   :  { %775 = vmatprep.subr.bf16.mxu0 %v846_v1  ;;  %v854_v9 = vld [vmem:[%s1190_s0 + $0x38] sm:$0xff]   ;;  %v855_v10 = vld [vmem:[%s1190_s0 + $0x40] sm:$0xff]   ;;  %v856_v11 = vld [vmem:[%s1190_s0 + $0x48] sm:$0xff]  }
   0x5   :  { %v857_v12 = vld [vmem:[%s1190_s0 + $0x50] sm:$0xff]   ;;  %v858_v13 = vld [vmem:[%s1190_s0 + $0x58] sm:$0xff]   ;;  %v859_v14 = vld [vmem:[%s1190_s0 + $0x60] sm:$0xff]  }
   0x6   :  { %v860_v15 = vld [vmem:[%s1190_s0 + $0x68] sm:$0xff]   ;;  %v861_v16 = vld [vmem:[%s1190_s0 + $0x70] sm:$0xff]   ;;  %v862_v17 = vld [vmem:[%s1190_s0 + $0x78] sm:$0xff]  }
   0x7   :  { %776 = vmatpush3.bf16.msra.mxu0 %v846_v1  ;;  %v863_v18 = vld [vmem:[%s1191_s3] sm:$0xff]   ;;  %v864_v19 = vld [vmem:[%s1191_s3 + $0x8] sm:$0xff]  }
   0x8   :  { %809 = vmatprep.subr.bf16.mxu1 %v863_v18  ;;  %v974_v20 = vld [vmem:[%s1192_s2] ss:$0 sm:$0xff] }
   0x9   :  { %810 = vmatpush3.bf16.msra.mxu1 %v863_v18 }
   0xa   :  { %778 = vmatmul.mubr.msk.bf16.vlgmr.msra.gmra.mrb[0].mxu0 %vm156_vm0, %v848_v3  ;;  %811 = vmatprep.subr.bf16.mxu1 %v864_v19 }
   0xb   :  { %781 = vmatprep.mubr.msk.bf16.mxu0 %vm156_vm0, %v849_v4 }
   0xd   :  { %812 = vmatpush3.bf16.msra.mxu1 %v864_v19 }
  0x12   :  { %782 = vmatmul.mubr.msk.bf16.gmra.mrb[4].mxu0 %vm156_vm0, %v850_v5 }
  0x13   :  { %785 = vmatprep.mubr.msk.bf16.mxu0 %vm156_vm0, %v851_v6 }
  0x1a   :  { %786 = vmatmul.mubr.msk.bf16.gmra.mrb[8].mxu0 %vm156_vm0, %v852_v7 }
  0x1b   :  { %789 = vmatprep.mubr.msk.bf16.mxu0 %vm156_vm0, %v853_v8 }
  0x22   :  { %790 = vmatmul.mubr.msk.bf16.gmra.mrb[12].mxu0 %vm156_vm0, %v854_v9 }
  0x23   :  { %793 = vmatprep.mubr.msk.bf16.mxu0 %vm156_vm0, %v855_v10 }
  0x2a   :  { %794 = vmatmul.mubr.msk.bf16.gmra.mrb[16].mxu0 %vm156_vm0, %v856_v11 }
  0x2b   :  { %797 = vmatprep.mubr.msk.bf16.mxu0 %vm156_vm0, %v857_v12 }
  0x32   :  { %798 = vmatmul.mubr.msk.bf16.gmra.mrb[20].mxu0 %vm156_vm0, %v858_v13 }
  0x33   :  { %801 = vmatprep.mubr.msk.bf16.mxu0 %vm156_vm0, %v859_v14 }
  0x3a   :  { %802 = vmatmul.mubr.msk.bf16.gmra.mrb[24].mxu0 %vm156_vm0, %v860_v15 }
  0x3b   :  { %805 = vmatprep.mubr.msk.bf16.mxu0 %vm156_vm0, %v861_v16 }
  0x42   :  { %806 = vmatmul.mubr.msk.bf16.gmra.mrb[28].mxu0 %vm156_vm0, %v862_v17 }
  0xdd   :  { %v779_v21 = vpop.f32.mrb[0].mxu0 }
  0xde   :  { %v248_v22 = vadd.f32 %v779_v21, %v974_v20  ;;  %v239_v23 = vpop.f32.mrb[1].mxu0 }
  0xdf   :  { %v240_v24 = vadd.f32 %v974_v20, %v239_v23  ;;  %v780_v25 = vpop.f32.mrb[2].mxu0 }
  0xe0   :  { %v251_v26 = vadd.f32 %v780_v25, %v974_v20  ;;  %v242_v27 = vpop.f32.mrb[3].mxu0  ;;  %v368_v29 = vmax.f32 %v248_v22, 0.0 }
  0xe1   :  { %v243_v28 = vadd.f32 %v974_v20, %v242_v27  ;;  %v366_v31 = vmax.f32 %v240_v24, 0.0 }
  0xe2   :  { %v369_v30 = vmax.f32 %v251_v26, 0.0 }
  0xe3   :  { %v367_v32 = vmax.f32 %v243_v28, 0.0 }
  0xe4   :  { %v399_v33 = vpack.c.bf16 %v369_v30, %v368_v29 }
  0xe5   :  { %v783_v34 = vpop.f32.mrb[4].mxu0  ;;  %v398_v35 = vpack.c.bf16 %v367_v32, %v366_v31 }
  0xe6   :  { %v264_v36 = vadd.f32 %v783_v34, %v974_v20  ;;  %v255_v37 = vpop.f32.mrb[5].mxu0 }
  0xe7   :  { %v256_v38 = vadd.f32 %v974_v20, %v255_v37  ;;  %v784_v39 = vpop.f32.mrb[6].mxu0  ;;  %813 = vmatprep.mubr.msk.bf16.mxu1 %vm156_vm0, %v398_v35 }
  0xe8   :  { %v267_v40 = vadd.f32 %v784_v39, %v974_v20  ;;  %v258_v41 = vpop.f32.mrb[7].mxu0  ;;  %814 = vmatmul.mubr.msk.bf16.vlgmr.msra.gmra.mrb[0].mxu1 %vm156_vm0, %v399_v33  ;;  %v372_v43 = vmax.f32 %v264_v36, 0.0 }
  0xe9   :  { %v259_v42 = vadd.f32 %v974_v20, %v258_v41  ;;  %v370_v45 = vmax.f32 %v256_v38, 0.0 }
  0xea   :  { %v373_v44 = vmax.f32 %v267_v40, 0.0 }
  0xeb   :  { %v371_v46 = vmax.f32 %v259_v42, 0.0 }
  0xec   :  { %v401_v47 = vpack.c.bf16 %v373_v44, %v372_v43 }
  0xed   :  { %v400_v48 = vpack.c.bf16 %v371_v46, %v370_v45  ;;  %v787_v49 = vpop.f32.mrb[8].mxu0 }
  0xee   :  { %v280_v50 = vadd.f32 %v787_v49, %v974_v20  ;;  %v271_v51 = vpop.f32.mrb[9].mxu0 }
  0xef   :  { %v272_v52 = vadd.f32 %v974_v20, %v271_v51  ;;  %v788_v53 = vpop.f32.mrb[10].mxu0  ;;  %817 = vmatprep.mubr.msk.bf16.mxu1 %vm156_vm0, %v400_v48 }
  0xf0   :  { %v283_v54 = vadd.f32 %v788_v53, %v974_v20  ;;  %v274_v55 = vpop.f32.mrb[11].mxu0  ;;  %818 = vmatmul.mubr.msk.bf16.gmra.mrb[4].mxu1 %vm156_vm0, %v401_v47  ;;  %v376_v57 = vmax.f32 %v280_v50, 0.0 }
  0xf1   :  { %v275_v56 = vadd.f32 %v974_v20, %v274_v55  ;;  %v374_v59 = vmax.f32 %v272_v52, 0.0 }
  0xf2   :  { %v377_v58 = vmax.f32 %v283_v54, 0.0 }
  0xf3   :  { %v375_v60 = vmax.f32 %v275_v56, 0.0 }
  0xf4   :  { %v403_v61 = vpack.c.bf16 %v377_v58, %v376_v57 }
  0xf5   :  { %v402_v62 = vpack.c.bf16 %v375_v60, %v374_v59  ;;  %v791_v63 = vpop.f32.mrb[12].mxu0 }
  0xf6   :  { %v296_v0 = vadd.f32 %v791_v63, %v974_v20  ;;  %v287_v1 = vpop.f32.mrb[13].mxu0 }
  0xf7   :  { %v288_v2 = vadd.f32 %v974_v20, %v287_v1  ;;  %v792_v3 = vpop.f32.mrb[14].mxu0  ;;  %821 = vmatprep.mubr.msk.bf16.mxu1 %vm156_vm0, %v402_v62 }
  0xf8   :  { %v299_v4 = vadd.f32 %v792_v3, %v974_v20  ;;  %v290_v5 = vpop.f32.mrb[15].mxu0  ;;  %822 = vmatmul.mubr.msk.bf16.gmra.mrb[8].mxu1 %vm156_vm0, %v403_v61  ;;  %v380_v7 = vmax.f32 %v296_v0, 0.0 }
  0xf9   :  { %v291_v6 = vadd.f32 %v974_v20, %v290_v5  ;;  %v378_v9 = vmax.f32 %v288_v2, 0.0 }
  0xfa   :  { %v381_v8 = vmax.f32 %v299_v4, 0.0 }
  0xfb   :  { %v379_v10 = vmax.f32 %v291_v6, 0.0  ;;  %v1027_v6 = vld [vmem:[%s1193_s4] ss:$0 sm:$0xff] }
  0xfc   :  { %v405_v11 = vpack.c.bf16 %v381_v8, %v380_v7 }
  0xfd   :  { %v404_v12 = vpack.c.bf16 %v379_v10, %v378_v9  ;;  %v795_v13 = vpop.f32.mrb[16].mxu0 }
  0xfe   :  { %v312_v14 = vadd.f32 %v795_v13, %v974_v20  ;;  %v303_v15 = vpop.f32.mrb[17].mxu0 }
  0xff   :  { %v304_v16 = vadd.f32 %v974_v20, %v303_v15  ;;  %v796_v17 = vpop.f32.mrb[18].mxu0  ;;  %825 = vmatprep.mubr.msk.bf16.mxu1 %vm156_vm0, %v404_v12 }
 0x100   :  { %v315_v18 = vadd.f32 %v796_v17, %v974_v20  ;;  %v306_v19 = vpop.f32.mrb[19].mxu0  ;;  %826 = vmatmul.mubr.msk.bf16.gmra.mrb[12].mxu1 %vm156_vm0, %v405_v11  ;;  %v384_v22 = vmax.f32 %v312_v14, 0.0 }
 0x101   :  { %v307_v21 = vadd.f32 %v974_v20, %v306_v19  ;;  %v382_v24 = vmax.f32 %v304_v16, 0.0 }
 0x102   :  { %v385_v23 = vmax.f32 %v315_v18, 0.0 }
 0x103   :  { %v383_v25 = vmax.f32 %v307_v21, 0.0 }
 0x104   :  { %v407_v26 = vpack.c.bf16 %v385_v23, %v384_v22 }
 0x105   :  { %v406_v27 = vpack.c.bf16 %v383_v25, %v382_v24  ;;  %v799_v28 = vpop.f32.mrb[20].mxu0 }
 0x106   :  { %v328_v29 = vadd.f32 %v799_v28, %v974_v20  ;;  %v319_v30 = vpop.f32.mrb[21].mxu0 }
 0x107   :  { %v320_v31 = vadd.f32 %v974_v20, %v319_v30  ;;  %v800_v32 = vpop.f32.mrb[22].mxu0  ;;  %829 = vmatprep.mubr.msk.bf16.mxu1 %vm156_vm0, %v406_v27 }
 0x108   :  { %v331_v33 = vadd.f32 %v800_v32, %v974_v20  ;;  %v322_v34 = vpop.f32.mrb[23].mxu0  ;;  %830 = vmatmul.mubr.msk.bf16.gmra.mrb[16].mxu1 %vm156_vm0, %v407_v26  ;;  %v388_v36 = vmax.f32 %v328_v29, 0.0 }
 0x109   :  { %v323_v35 = vadd.f32 %v974_v20, %v322_v34  ;;  %v386_v38 = vmax.f32 %v320_v31, 0.0 }
 0x10a   :  { %v389_v37 = vmax.f32 %v331_v33, 0.0 }
 0x10b   :  { %v387_v39 = vmax.f32 %v323_v35, 0.0 }
 0x10c   :  { %v409_v40 = vpack.c.bf16 %v389_v37, %v388_v36 }
 0x10d   :  { %v408_v41 = vpack.c.bf16 %v387_v39, %v386_v38  ;;  %v803_v42 = vpop.f32.mrb[24].mxu0 }
 0x10e   :  { %v344_v43 = vadd.f32 %v803_v42, %v974_v20  ;;  %v335_v44 = vpop.f32.mrb[25].mxu0 }
 0x10f   :  { %v336_v45 = vadd.f32 %v974_v20, %v335_v44  ;;  %v804_v46 = vpop.f32.mrb[26].mxu0  ;;  %833 = vmatprep.mubr.msk.bf16.mxu1 %vm156_vm0, %v408_v41 }
 0x110   :  { %v347_v47 = vadd.f32 %v804_v46, %v974_v20  ;;  %v338_v48 = vpop.f32.mrb[27].mxu0  ;;  %834 = vmatmul.mubr.msk.bf16.gmra.mrb[20].mxu1 %vm156_vm0, %v409_v40  ;;  %v392_v50 = vmax.f32 %v344_v43, 0.0 }
 0x111   :  { %v339_v49 = vadd.f32 %v974_v20, %v338_v48  ;;  %v390_v52 = vmax.f32 %v336_v45, 0.0 }
 0x112   :  { %v393_v51 = vmax.f32 %v347_v47, 0.0 }
 0x113   :  { %v391_v53 = vmax.f32 %v339_v49, 0.0 }
 0x114   :  { %v411_v54 = vpack.c.bf16 %v393_v51, %v392_v50 }
 0x115   :  { %v410_v55 = vpack.c.bf16 %v391_v53, %v390_v52  ;;  %v807_v56 = vpop.f32.mrb[28].mxu0 }
 0x116   :  { %v360_v57 = vadd.f32 %v807_v56, %v974_v20  ;;  %v351_v58 = vpop.f32.mrb[29].mxu0 }
 0x117   :  { %v352_v59 = vadd.f32 %v974_v20, %v351_v58  ;;  %v808_v60 = vpop.f32.mrb[30].mxu0  ;;  %837 = vmatprep.mubr.msk.bf16.mxu1 %vm156_vm0, %v410_v55 }
 0x118   :  { %v363_v61 = vadd.f32 %v808_v60, %v974_v20  ;;  %v354_v62 = vpop.f32.mrb[31].mxu0  ;;  %838 = vmatmul.mubr.msk.bf16.gmra.mrb[24].mxu1 %vm156_vm0, %v411_v54  ;;  %v396_v0 = vmax.f32 %v360_v57, 0.0 }
 0x119   :  { %v355_v63 = vadd.f32 %v974_v20, %v354_v62  ;;  %v394_v2 = vmax.f32 %v352_v59, 0.0 }
 0x11a   :  { %v397_v1 = vmax.f32 %v363_v61, 0.0 }
 0x11b   :  { %v395_v3 = vmax.f32 %v355_v63, 0.0 }
 0x11c   :  { %v413_v4 = vpack.c.bf16 %v397_v1, %v396_v0 }
 0x11d   :  { %v412_v5 = vpack.c.bf16 %v395_v3, %v394_v2 }
 0x11f   :  { %841 = vmatprep.mubr.msk.bf16.mxu1 %vm156_vm0, %v412_v5 }
 0x120   :  { %842 = vmatmul.mubr.msk.bf16.gmra.mrb[28].mxu1 %vm156_vm0, %v413_v4 }
 0x1bb   :  { %v815_v7 = vpop.f32.mrb[0].mxu1 }
 0x1bc   :  { %v528_v8 = vadd.f32 %v815_v7, %v1027_v6  ;;  %v519_v20 = vpop.f32.mrb[1].mxu1 }
 0x1bd   :  { %v520_v9 = vadd.f32 %v1027_v6, %v519_v20  ;;  %v816_v10 = vpop.f32.mrb[2].mxu1 }
 0x1be   :  { %649 = vst.msk [vmem:[%s1194_s5 + $0x10] sm:$0xff] %vm646_vm1, %v528_v8  ;;  %v531_v11 = vadd.f32 %v816_v10, %v1027_v6  ;;  %v522_v12 = vpop.f32.mrb[3].mxu1 }
 0x1bf   :  { %647 = vst.msk [vmem:[%s1194_s5] sm:$0xff] %vm646_vm1, %v520_v9  ;;  %v523_v13 = vadd.f32 %v1027_v6, %v522_v12 }
 0x1c0   :  { %650 = vst.msk [vmem:[%s1194_s5 + $0x18] sm:$0xff] %vm646_vm1, %v531_v11 }
 0x1c1   :  { %648 = vst.msk [vmem:[%s1194_s5 + $0x8] sm:$0xff] %vm646_vm1, %v523_v13 }
 0x1c3   :  { %v819_v14 = vpop.f32.mrb[4].mxu1 }
 0x1c4   :  { %v544_v15 = vadd.f32 %v819_v14, %v1027_v6  ;;  %v535_v16 = vpop.f32.mrb[5].mxu1 }
 0x1c5   :  { %v536_v17 = vadd.f32 %v1027_v6, %v535_v16  ;;  %v820_v18 = vpop.f32.mrb[6].mxu1 }
 0x1c6   :  { %653 = vst.msk [vmem:[%s1194_s5 + $0x30] sm:$0xff] %vm646_vm1, %v544_v15  ;;  %v547_v19 = vadd.f32 %v820_v18, %v1027_v6  ;;  %v538_v21 = vpop.f32.mrb[7].mxu1 }
 0x1c7   :  { %651 = vst.msk [vmem:[%s1194_s5 + $0x20] sm:$0xff] %vm646_vm1, %v536_v17  ;;  %v539_v22 = vadd.f32 %v1027_v6, %v538_v21 }
 0x1c8   :  { %654 = vst.msk [vmem:[%s1194_s5 + $0x38] sm:$0xff] %vm646_vm1, %v547_v19 }
 0x1c9   :  { %652 = vst.msk [vmem:[%s1194_s5 + $0x28] sm:$0xff] %vm646_vm1, %v539_v22 }
 0x1cb   :  { %v823_v23 = vpop.f32.mrb[8].mxu1 }
 0x1cc   :  { %v560_v24 = vadd.f32 %v823_v23, %v1027_v6  ;;  %v551_v25 = vpop.f32.mrb[9].mxu1 }
 0x1cd   :  { %v552_v26 = vadd.f32 %v1027_v6, %v551_v25  ;;  %v824_v27 = vpop.f32.mrb[10].mxu1 }
 0x1ce   :  { %657 = vst.msk [vmem:[%s1194_s5 + $0x50] sm:$0xff] %vm646_vm1, %v560_v24  ;;  %v563_v28 = vadd.f32 %v824_v27, %v1027_v6  ;;  %v554_v29 = vpop.f32.mrb[11].mxu1 }
 0x1cf   :  { %655 = vst.msk [vmem:[%s1194_s5 + $0x40] sm:$0xff] %vm646_vm1, %v552_v26  ;;  %v555_v30 = vadd.f32 %v1027_v6, %v554_v29 }
 0x1d0   :  { %658 = vst.msk [vmem:[%s1194_s5 + $0x58] sm:$0xff] %vm646_vm1, %v563_v28 }
 0x1d1   :  { %656 = vst.msk [vmem:[%s1194_s5 + $0x48] sm:$0xff] %vm646_vm1, %v555_v30 }
 0x1d3   :  { %v827_v31 = vpop.f32.mrb[12].mxu1 }
 0x1d4   :  { %v576_v32 = vadd.f32 %v827_v31, %v1027_v6  ;;  %v567_v33 = vpop.f32.mrb[13].mxu1 }
 0x1d5   :  { %v568_v34 = vadd.f32 %v1027_v6, %v567_v33  ;;  %v828_v35 = vpop.f32.mrb[14].mxu1 }
 0x1d6   :  { %661 = vst.msk [vmem:[%s1194_s5 + $0x70] sm:$0xff] %vm646_vm1, %v576_v32  ;;  %v579_v36 = vadd.f32 %v828_v35, %v1027_v6  ;;  %v570_v37 = vpop.f32.mrb[15].mxu1 }
 0x1d7   :  { %659 = vst.msk [vmem:[%s1194_s5 + $0x60] sm:$0xff] %vm646_vm1, %v568_v34  ;;  %v571_v38 = vadd.f32 %v1027_v6, %v570_v37 }
 0x1d8   :  { %662 = vst.msk [vmem:[%s1194_s5 + $0x78] sm:$0xff] %vm646_vm1, %v579_v36 }
 0x1d9   :  { %660 = vst.msk [vmem:[%s1194_s5 + $0x68] sm:$0xff] %vm646_vm1, %v571_v38 }
 0x1db   :  { %v831_v39 = vpop.f32.mrb[16].mxu1 }
 0x1dc   :  { %v592_v40 = vadd.f32 %v831_v39, %v1027_v6  ;;  %v583_v41 = vpop.f32.mrb[17].mxu1 }
 0x1dd   :  { %v584_v42 = vadd.f32 %v1027_v6, %v583_v41  ;;  %v832_v43 = vpop.f32.mrb[18].mxu1 }
 0x1de   :  { %665 = vst.msk [vmem:[%s1194_s5 + $0x90] sm:$0xff] %vm646_vm1, %v592_v40  ;;  %v595_v44 = vadd.f32 %v832_v43, %v1027_v6  ;;  %v586_v45 = vpop.f32.mrb[19].mxu1 }
 0x1df   :  { %663 = vst.msk [vmem:[%s1194_s5 + $0x80] sm:$0xff] %vm646_vm1, %v584_v42  ;;  %v587_v46 = vadd.f32 %v1027_v6, %v586_v45 }
 0x1e0   :  { %666 = vst.msk [vmem:[%s1194_s5 + $0x98] sm:$0xff] %vm646_vm1, %v595_v44 }
 0x1e1   :  { %664 = vst.msk [vmem:[%s1194_s5 + $0x88] sm:$0xff] %vm646_vm1, %v587_v46 }
 0x1e3   :  { %v835_v47 = vpop.f32.mrb[20].mxu1 }
 0x1e4   :  { %v608_v48 = vadd.f32 %v835_v47, %v1027_v6  ;;  %v599_v49 = vpop.f32.mrb[21].mxu1 }
 0x1e5   :  { %v600_v50 = vadd.f32 %v1027_v6, %v599_v49  ;;  %v836_v51 = vpop.f32.mrb[22].mxu1 }
 0x1e6   :  { %669 = vst.msk [vmem:[%s1194_s5 + $0xb0] sm:$0xff] %vm646_vm1, %v608_v48  ;;  %v611_v52 = vadd.f32 %v836_v51, %v1027_v6  ;;  %v602_v53 = vpop.f32.mrb[23].mxu1 }
 0x1e7   :  { %667 = vst.msk [vmem:[%s1194_s5 + $0xa0] sm:$0xff] %vm646_vm1, %v600_v50  ;;  %v603_v54 = vadd.f32 %v1027_v6, %v602_v53 }
 0x1e8   :  { %670 = vst.msk [vmem:[%s1194_s5 + $0xb8] sm:$0xff] %vm646_vm1, %v611_v52 }
 0x1e9   :  { %668 = vst.msk [vmem:[%s1194_s5 + $0xa8] sm:$0xff] %vm646_vm1, %v603_v54 }
 0x1eb   :  { %v839_v55 = vpop.f32.mrb[24].mxu1 }
 0x1ec   :  { %v624_v56 = vadd.f32 %v839_v55, %v1027_v6  ;;  %v615_v57 = vpop.f32.mrb[25].mxu1 }
 0x1ed   :  { %v616_v58 = vadd.f32 %v1027_v6, %v615_v57  ;;  %v840_v59 = vpop.f32.mrb[26].mxu1 }
 0x1ee   :  { %673 = vst.msk [vmem:[%s1194_s5 + $0xd0] sm:$0xff] %vm646_vm1, %v624_v56  ;;  %v627_v60 = vadd.f32 %v840_v59, %v1027_v6  ;;  %v618_v61 = vpop.f32.mrb[27].mxu1 }
 0x1ef   :  { %671 = vst.msk [vmem:[%s1194_s5 + $0xc0] sm:$0xff] %vm646_vm1, %v616_v58  ;;  %v619_v62 = vadd.f32 %v1027_v6, %v618_v61 }
 0x1f0   :  { %674 = vst.msk [vmem:[%s1194_s5 + $0xd8] sm:$0xff] %vm646_vm1, %v627_v60 }
 0x1f1   :  { %672 = vst.msk [vmem:[%s1194_s5 + $0xc8] sm:$0xff] %vm646_vm1, %v619_v62 }
 0x1f3   :  { %v843_v63 = vpop.f32.mrb[28].mxu1 }
 0x1f4   :  { %v640_v0 = vadd.f32 %v843_v63, %v1027_v6  ;;  %v631_v1 = vpop.f32.mrb[29].mxu1 }
 0x1f5   :  { %v632_v2 = vadd.f32 %v1027_v6, %v631_v1  ;;  %v844_v3 = vpop.f32.mrb[30].mxu1 }
 0x1f6   :  { %677 = vst.msk [vmem:[%s1194_s5 + $0xf0] sm:$0xff] %vm646_vm1, %v640_v0  ;;  %v643_v4 = vadd.f32 %v844_v3, %v1027_v6  ;;  %v634_v5 = vpop.f32.mrb[31].mxu1 }
 0x1f7   :  { %675 = vst.msk [vmem:[%s1194_s5 + $0xe0] sm:$0xff] %vm646_vm1, %v632_v2  ;;  %v635_v7 = vadd.f32 %v1027_v6, %v634_v5 }
 0x1f8   :  { %678 = vst.msk [vmem:[%s1194_s5 + $0xf8] sm:$0xff] %vm646_vm1, %v643_v4 }
 0x1f9   :  { %676 = vst.msk [vmem:[%s1194_s5 + $0xe8] sm:$0xff] %vm646_vm1, %v635_v7 }

</bundles_post_ra>
